<compile_context>
chip_gen: v5e
topology: v5e:2x2
jax: 0.10.0
libtpu: 0.0.40
codegen_flags: <defaults>
</compile_context>

<pallas_src>
import jax
import jax.numpy as jnp
from jax.experimental import pallas as pl
from jax.experimental.pallas import tpu as pltpu

NUM_LAYERS = 2   # args.num_layers_adapter
DIM_FF = 32      # args.dim_feedforward_adapter


def _round_up(x, m):
    return (x + m - 1) // m * m


def _make_fused_kernel(n_pad, q_chunk, num_layers, has_padding):
    """Whole AdaptNet forward in one kernel (layers unrolled statically)."""
    n_chunks = n_pad // q_chunk

    def kernel(n_ref, scal_ref, x_ref, w1_ref, b1_ref, w2_ref, o_ref):
        # n_ref    : SMEM (1,)        int32  true token count
        # scal_ref : SMEM (L, 16)     f32    per-layer attention / bias scalars
        # x_ref    : VMEM (1, n_pad)  f32    padded residual row (input)
        # w1_ref   : VMEM (L, F, 1)   f32    linear1 weight columns
        # b1_ref   : VMEM (L, F, 1)   f32    linear1 bias columns
        # w2_ref   : VMEM (L, 1, F)   f32    linear2 weight rows
        # o_ref    : VMEM (1, n_pad)  f32    sigmoid(x) output row
        x = x_ref[...]                                          # (1, n_pad)

        if has_padding:
            # Built once for the whole kernel; only exists if padding exists.
            kpos = jax.lax.broadcasted_iota(jnp.int32, (1, n_pad), 1)
            neg_row = jnp.where(kpos < n_ref[0], 0.0, -jnp.inf)  # (1, n_pad)

        for l in range(num_layers):
            wq = scal_ref[l, 0]; wk = scal_ref[l, 1]; wv = scal_ref[l, 2]
            bq = scal_ref[l, 3]; bk = scal_ref[l, 4]; bv = scal_ref[l, 5]
            wo = scal_ref[l, 6]; bo = scal_ref[l, 7]; b2 = scal_ref[l, 8]

            # q/k/v projections hoisted: O(n) per layer, lane-dense rows.
            q_row = wq * x + bq                                  # (1, n_pad)
            k_row = wk * x + bk                                  # (1, n_pad)
            v_row = wv * x + bv                                  # (1, n_pad)
            w1_col = w1_ref[l]                                   # (F, 1)
            b1_col = b1_ref[l]                                   # (F, 1)
            w2_row = w2_ref[l]                                   # (1, F)

            new_chunks = []
            for c in range(n_chunks):                            # static unroll
                sl = slice(c * q_chunk, (c + 1) * q_chunk)
                xq = x[:, sl]                                    # (1, Tq)
                q_col = jnp.transpose(q_row[:, sl])              # (Tq, 1)

                # scores[i, j] = q_i * k_j   (d_model = 1 => scale = 1)
                scores = q_col * k_row                           # (Tq, n_pad)
                if has_padding:
                    scores = scores + neg_row                    # mask padded keys

                # Plain (non-online) softmax: full key extent in one pass.
                m = jnp.max(scores, axis=-1, keepdims=True)      # (Tq, 1)  XLU
                p = jnp.exp(scores - m)                          # (Tq, n_pad) EUP
                num = jnp.sum(p * v_row, axis=-1, keepdims=True)  # VPU + XLU
                den = jnp.sum(p, axis=-1, keepdims=True)          # XLU
                ctx = jnp.transpose(num / den)                    # (1, Tq)

                xa = xq + (wo * ctx + bo)                        # attn residual

                # Feed-forward in (F, Tq) layout; F-reduction on the MXU.
                h = jnp.maximum(w1_col * xa + b1_col, 0.0)       # (F, Tq)
                y = jnp.dot(w2_row, h,
                            preferred_element_type=jnp.float32)  # (1, Tq)
                new_chunks.append(xa + y + b2)                   # FF residual

            x = (new_chunks[0] if n_chunks == 1
                 else jnp.concatenate(new_chunks, axis=1))       # (1, n_pad)

        o_ref[...] = jax.nn.sigmoid(x)                           # fused sigmoid

    return kernel


def adaptnet_forward(a, params):
    scal, w1, b1, w2 = params
    n = int(a.size)
    n_pad = _round_up(max(n, 1), 128)           # lane-dense, 128-multiple
    q_chunk = min(n_pad, 512)                   # keeps (Tq, n_pad) temps small
    has_padding = n < n_pad

    x = jnp.zeros((1, n_pad), jnp.float32)
    x = x.at[0, :n].set(a.reshape(-1).astype(jnp.float32))
    n_arr = jnp.array([n], jnp.int32)

    kernel = _make_fused_kernel(n_pad, q_chunk, NUM_LAYERS, has_padding)
    smem = pl.BlockSpec(memory_space=pltpu.MemorySpace.SMEM)
    vmem = pl.BlockSpec(memory_space=pltpu.MemorySpace.VMEM)
    out = pl.pallas_call(
        kernel,
        out_shape=jax.ShapeDtypeStruct((1, n_pad), jnp.float32),
        in_specs=[smem, smem, vmem, vmem, vmem, vmem],
        out_specs=vmem,
        compiler_params=pltpu.CompilerParams(
            vmem_limit_bytes=32 * 1024 * 1024),
    )(n_arr, scal, x, w1, b1, w2)
    return out[0, :n]                           # matches torch .squeeze()


def init_params(key):
    # Deterministic synthetic init mirroring the torch parameter shapes.
    scal, w1, b1, w2 = [], [], [], []
    for l in range(NUM_LAYERS):
        ks = jax.random.split(jax.random.fold_in(key, l), 8)
        in_w = jax.random.normal(ks[0], (3,), jnp.float32) * 0.5     # in_proj_weight (3,1)
        in_b = jax.random.normal(ks[1], (3,), jnp.float32) * 0.1     # in_proj_bias (3,)
        out_w = jax.random.normal(ks[2], (), jnp.float32) * 0.5      # out_proj.weight (1,1)
        out_b = jax.random.normal(ks[3], (), jnp.float32) * 0.1      # out_proj.bias (1,)
        w1_l = jax.random.normal(ks[4], (DIM_FF, 1), jnp.float32) * 0.5   # linear1.weight (F,1)
        b1_l = jax.random.normal(ks[5], (DIM_FF, 1), jnp.float32) * 0.1   # linear1.bias (F,)
        w2_l = jax.random.normal(ks[6], (1, DIM_FF), jnp.float32) * 0.3   # linear2.weight (1,F)
        b2_l = jax.random.normal(ks[7], (), jnp.float32) * 0.1            # linear2.bias (1,)
        row = jnp.zeros((16,), jnp.float32)
        row = row.at[0:3].set(in_w).at[3:6].set(in_b)
        row = row.at[6].set(out_w).at[7].set(out_b).at[8].set(b2_l)
        scal.append(row); w1.append(w1_l); b1.append(b1_l); w2.append(w2_l)
    return (jnp.stack(scal),                    # (L, 16) scalars (SMEM)
            jnp.stack(w1),                      # (L, F, 1) linear1 weights
            jnp.stack(b1),                      # (L, F, 1) linear1 biases
            jnp.stack(w2))                      # (L, 1, F) linear2 weights


def ref_forward(a, params):
    # Pure-JAX reference mirroring the PyTorch module (eval mode).
    scal, w1, b1, w2 = params
    x = a.reshape(-1, 1).astype(jnp.float32)                     # (N, 1)
    for l in range(NUM_LAYERS):
        wq, wk, wv, bq, bk, bv, wo, bo, b2 = [scal[l, i] for i in range(9)]
        q = wq * x + bq; k = wk * x + bk; v = wv * x + bv
        attnw = jax.nn.softmax(q @ k.T, axis=-1)
        x = x + wo * (attnw @ v) + bo
        h = jax.nn.relu(x @ w1[l].T + b1[l].T)                   # (N, F)
        x = x + h @ w2[l].T + b2                                 # (N, 1)
    return jax.nn.sigmoid(x.reshape(-1))


if __name__ == "__main__":
    key = jax.random.PRNGKey(0)
    k_a, k_p = jax.random.split(key)
    params = init_params(k_p)

    # Small case (128 tokens, single query chunk, no padding).
    a = jax.random.normal(k_a, (2, 4, 16), jnp.float32)
    out = jax.block_until_ready(adaptnet_forward(a, params))
    ref = jax.block_until_ready(ref_forward(a, params))
    assert out.shape == ref.shape == (a.size,)
    assert jnp.allclose(out, ref, rtol=1e-3, atol=1e-3)

    # Larger, non-multiple case: exercises padding mask, the SMEM true-length
    # scalar and the in-kernel query chunking (N=1000 -> padded to 1024).
    a2 = jax.random.normal(jax.random.fold_in(key, 7), (1000,), jnp.float32)
    out2 = jax.block_until_ready(adaptnet_forward(a2, params))
    ref2 = jax.block_until_ready(ref_forward(a2, params))
    assert out2.shape == ref2.shape == (a2.size,)
    assert jnp.allclose(out2, ref2, rtol=1e-3, atol=1e-3)

    print("KERNEL_OK")
</pallas_src>

<mosaic_0001>
module attributes {stable_mosaic.version = 11 : i64} {
  func.func @kernel(%arg0: memref<1xi32, #tpu.memory_space<smem>>, %arg1: memref<2x16xf32, #tpu.memory_space<smem>>, %arg2: memref<1x128xf32, #tpu.memory_space<vmem>>, %arg3: memref<2x32x1xf32, #tpu.memory_space<vmem>>, %arg4: memref<2x32x1xf32, #tpu.memory_space<vmem>>, %arg5: memref<2x1x32xf32, #tpu.memory_space<vmem>>, %arg6: memref<1x128xf32, #tpu.memory_space<vmem>>) attributes {dimension_semantics = [], scalar_prefetch = 0 : i64, scratch_operands = 0 : i64, tpu.core_type = #tpu.core_type<tc>} {
    %c0 = arith.constant 0 : index
    %c0_0 = arith.constant 0 : index
    %0 = vector.load %arg2[%c0, %c0_0] : memref<1x128xf32, #tpu.memory_space<vmem>>, vector<1x128xf32>
    %c0_1 = arith.constant 0 : index
    %c0_2 = arith.constant 0 : index
    %1 = memref.load %arg1[%c0_1, %c0_2] : memref<2x16xf32, #tpu.memory_space<smem>>
    %c0_3 = arith.constant 0 : index
    %c1 = arith.constant 1 : index
    %2 = memref.load %arg1[%c0_3, %c1] : memref<2x16xf32, #tpu.memory_space<smem>>
    %c0_4 = arith.constant 0 : index
    %c2 = arith.constant 2 : index
    %3 = memref.load %arg1[%c0_4, %c2] : memref<2x16xf32, #tpu.memory_space<smem>>
    %c0_5 = arith.constant 0 : index
    %c3 = arith.constant 3 : index
    %4 = memref.load %arg1[%c0_5, %c3] : memref<2x16xf32, #tpu.memory_space<smem>>
    %c0_6 = arith.constant 0 : index
    %c4 = arith.constant 4 : index
    %5 = memref.load %arg1[%c0_6, %c4] : memref<2x16xf32, #tpu.memory_space<smem>>
    %c0_7 = arith.constant 0 : index
    %c5 = arith.constant 5 : index
    %6 = memref.load %arg1[%c0_7, %c5] : memref<2x16xf32, #tpu.memory_space<smem>>
    %c0_8 = arith.constant 0 : index
    %c6 = arith.constant 6 : index
    %7 = memref.load %arg1[%c0_8, %c6] : memref<2x16xf32, #tpu.memory_space<smem>>
    %c0_9 = arith.constant 0 : index
    %c7 = arith.constant 7 : index
    %8 = memref.load %arg1[%c0_9, %c7] : memref<2x16xf32, #tpu.memory_space<smem>>
    %c0_10 = arith.constant 0 : index
    %c8 = arith.constant 8 : index
    %9 = memref.load %arg1[%c0_10, %c8] : memref<2x16xf32, #tpu.memory_space<smem>>
    %10 = vector.broadcast %1 : f32 to vector<1x128xf32>
    %11 = arith.mulf %10, %0 : vector<1x128xf32>
    %12 = vector.broadcast %4 : f32 to vector<1x128xf32>
    %13 = arith.addf %11, %12 : vector<1x128xf32>
    %14 = vector.broadcast %2 : f32 to vector<1x128xf32>
    %15 = arith.mulf %14, %0 : vector<1x128xf32>
    %16 = vector.broadcast %5 : f32 to vector<1x128xf32>
    %17 = arith.addf %15, %16 : vector<1x128xf32>
    %18 = vector.broadcast %3 : f32 to vector<1x128xf32>
    %19 = arith.mulf %18, %0 : vector<1x128xf32>
    %20 = vector.broadcast %6 : f32 to vector<1x128xf32>
    %21 = arith.addf %19, %20 : vector<1x128xf32>
    %c0_11 = arith.constant 0 : index
    %c0_12 = arith.constant 0 : index
    %c0_13 = arith.constant 0 : index
    %22 = vector.load %arg3[%c0_11, %c0_12, %c0_13] : memref<2x32x1xf32, #tpu.memory_space<vmem>>, vector<1x32x1xf32>
    %23 = vector.shape_cast %22 : vector<1x32x1xf32> to vector<32x1xf32>
    %c0_14 = arith.constant 0 : index
    %c0_15 = arith.constant 0 : index
    %c0_16 = arith.constant 0 : index
    %24 = vector.load %arg4[%c0_14, %c0_15, %c0_16] : memref<2x32x1xf32, #tpu.memory_space<vmem>>, vector<1x32x1xf32>
    %25 = vector.shape_cast %24 : vector<1x32x1xf32> to vector<32x1xf32>
    %c0_17 = arith.constant 0 : index
    %c0_18 = arith.constant 0 : index
    %c0_19 = arith.constant 0 : index
    %26 = vector.load %arg5[%c0_17, %c0_18, %c0_19] : memref<2x1x32xf32, #tpu.memory_space<vmem>>, vector<1x1x32xf32>
    %27 = vector.shape_cast %26 : vector<1x1x32xf32> to vector<1x32xf32>
    %28 = tpu.transpose %13, [1, 0] : vector<1x128xf32> -> vector<128x1xf32>
    %29 = vector.broadcast %28 : vector<128x1xf32> to vector<128x128xf32>
    %30 = vector.broadcast %17 : vector<1x128xf32> to vector<128x128xf32>
    %31 = arith.mulf %29, %30 : vector<128x128xf32>
    %cst = arith.constant dense<0xFF800000> : vector<128xf32>
    %32 = vector.multi_reduction <maximumf>, %31, %cst [1] : vector<128x128xf32> to vector<128xf32>
    %33 = vector.shape_cast %32 : vector<128xf32> to vector<128x1xf32>
    %34 = vector.broadcast %33 : vector<128x1xf32> to vector<128x128xf32>
    %35 = arith.subf %31, %34 : vector<128x128xf32>
    %36 = math.exp %35 : vector<128x128xf32>
    %37 = vector.broadcast %21 : vector<1x128xf32> to vector<128x128xf32>
    %38 = arith.mulf %36, %37 : vector<128x128xf32>
    %cst_20 = arith.constant dense<0.000000e+00> : vector<128xf32>
    %39 = vector.multi_reduction <add>, %38, %cst_20 [1] : vector<128x128xf32> to vector<128xf32>
    %40 = vector.shape_cast %39 : vector<128xf32> to vector<128x1xf32>
    %cst_21 = arith.constant dense<0.000000e+00> : vector<128xf32>
    %41 = vector.multi_reduction <add>, %36, %cst_21 [1] : vector<128x128xf32> to vector<128xf32>
    %42 = vector.shape_cast %41 : vector<128xf32> to vector<128x1xf32>
    %43 = arith.divf %40, %42 : vector<128x1xf32>
    %44 = tpu.transpose %43, [1, 0] : vector<128x1xf32> -> vector<1x128xf32>
    %45 = vector.broadcast %7 : f32 to vector<1x128xf32>
    %46 = arith.mulf %45, %44 : vector<1x128xf32>
    %47 = vector.broadcast %8 : f32 to vector<1x128xf32>
    %48 = arith.addf %46, %47 : vector<1x128xf32>
    %49 = arith.addf %0, %48 : vector<1x128xf32>
    %50 = vector.broadcast %23 : vector<32x1xf32> to vector<32x128xf32>
    %51 = vector.broadcast %49 : vector<1x128xf32> to vector<32x128xf32>
    %52 = arith.mulf %50, %51 : vector<32x128xf32>
    %53 = vector.broadcast %25 : vector<32x1xf32> to vector<32x128xf32>
    %54 = arith.addf %52, %53 : vector<32x128xf32>
    %cst_22 = arith.constant 0.000000e+00 : f32
    %55 = vector.broadcast %cst_22 : f32 to vector<32x128xf32>
    %56 = arith.maximumf %54, %55 : vector<32x128xf32>
    %cst_23 = arith.constant dense<0.000000e+00> : vector<1x128xf32>
    %57 = tpu.matmul %27, %56, %cst_23 {dimension_numbers = #tpu.dot_dimension_numbers<[1], [0], [0], [1], [0, 0, 1, 1], [], []>} : vector<1x32xf32>, vector<32x128xf32>, vector<1x128xf32> -> vector<1x128xf32>
    %58 = arith.addf %49, %57 : vector<1x128xf32>
    %59 = vector.broadcast %9 : f32 to vector<1x128xf32>
    %60 = arith.addf %58, %59 : vector<1x128xf32>
    %c1_24 = arith.constant 1 : index
    %c0_25 = arith.constant 0 : index
    %61 = memref.load %arg1[%c1_24, %c0_25] : memref<2x16xf32, #tpu.memory_space<smem>>
    %c1_26 = arith.constant 1 : index
    %c1_27 = arith.constant 1 : index
    %62 = memref.load %arg1[%c1_26, %c1_27] : memref<2x16xf32, #tpu.memory_space<smem>>
    %c1_28 = arith.constant 1 : index
    %c2_29 = arith.constant 2 : index
    %63 = memref.load %arg1[%c1_28, %c2_29] : memref<2x16xf32, #tpu.memory_space<smem>>
    %c1_30 = arith.constant 1 : index
    %c3_31 = arith.constant 3 : index
    %64 = memref.load %arg1[%c1_30, %c3_31] : memref<2x16xf32, #tpu.memory_space<smem>>
    %c1_32 = arith.constant 1 : index
    %c4_33 = arith.constant 4 : index
    %65 = memref.load %arg1[%c1_32, %c4_33] : memref<2x16xf32, #tpu.memory_space<smem>>
    %c1_34 = arith.constant 1 : index
    %c5_35 = arith.constant 5 : index
    %66 = memref.load %arg1[%c1_34, %c5_35] : memref<2x16xf32, #tpu.memory_space<smem>>
    %c1_36 = arith.constant 1 : index
    %c6_37 = arith.constant 6 : index
    %67 = memref.load %arg1[%c1_36, %c6_37] : memref<2x16xf32, #tpu.memory_space<smem>>
    %c1_38 = arith.constant 1 : index
    %c7_39 = arith.constant 7 : index
    %68 = memref.load %arg1[%c1_38, %c7_39] : memref<2x16xf32, #tpu.memory_space<smem>>
    %c1_40 = arith.constant 1 : index
    %c8_41 = arith.constant 8 : index
    %69 = memref.load %arg1[%c1_40, %c8_41] : memref<2x16xf32, #tpu.memory_space<smem>>
    %70 = vector.broadcast %61 : f32 to vector<1x128xf32>
    %71 = arith.mulf %70, %60 : vector<1x128xf32>
    %72 = vector.broadcast %64 : f32 to vector<1x128xf32>
    %73 = arith.addf %71, %72 : vector<1x128xf32>
    %74 = vector.broadcast %62 : f32 to vector<1x128xf32>
    %75 = arith.mulf %74, %60 : vector<1x128xf32>
    %76 = vector.broadcast %65 : f32 to vector<1x128xf32>
    %77 = arith.addf %75, %76 : vector<1x128xf32>
    %78 = vector.broadcast %63 : f32 to vector<1x128xf32>
    %79 = arith.mulf %78, %60 : vector<1x128xf32>
    %80 = vector.broadcast %66 : f32 to vector<1x128xf32>
    %81 = arith.addf %79, %80 : vector<1x128xf32>
    %c1_42 = arith.constant 1 : index
    %c0_43 = arith.constant 0 : index
    %c0_44 = arith.constant 0 : index
    %82 = vector.load %arg3[%c1_42, %c0_43, %c0_44] : memref<2x32x1xf32, #tpu.memory_space<vmem>>, vector<1x32x1xf32>
    %83 = vector.shape_cast %82 : vector<1x32x1xf32> to vector<32x1xf32>
    %c1_45 = arith.constant 1 : index
    %c0_46 = arith.constant 0 : index
    %c0_47 = arith.constant 0 : index
    %84 = vector.load %arg4[%c1_45, %c0_46, %c0_47] : memref<2x32x1xf32, #tpu.memory_space<vmem>>, vector<1x32x1xf32>
    %85 = vector.shape_cast %84 : vector<1x32x1xf32> to vector<32x1xf32>
    %c1_48 = arith.constant 1 : index
    %c0_49 = arith.constant 0 : index
    %c0_50 = arith.constant 0 : index
    %86 = vector.load %arg5[%c1_48, %c0_49, %c0_50] : memref<2x1x32xf32, #tpu.memory_space<vmem>>, vector<1x1x32xf32>
    %87 = vector.shape_cast %86 : vector<1x1x32xf32> to vector<1x32xf32>
    %88 = tpu.transpose %73, [1, 0] : vector<1x128xf32> -> vector<128x1xf32>
    %89 = vector.broadcast %88 : vector<128x1xf32> to vector<128x128xf32>
    %90 = vector.broadcast %77 : vector<1x128xf32> to vector<128x128xf32>
    %91 = arith.mulf %89, %90 : vector<128x128xf32>
    %cst_51 = arith.constant dense<0xFF800000> : vector<128xf32>
    %92 = vector.multi_reduction <maximumf>, %91, %cst_51 [1] : vector<128x128xf32> to vector<128xf32>
    %93 = vector.shape_cast %92 : vector<128xf32> to vector<128x1xf32>
    %94 = vector.broadcast %93 : vector<128x1xf32> to vector<128x128xf32>
    %95 = arith.subf %91, %94 : vector<128x128xf32>
    %96 = math.exp %95 : vector<128x128xf32>
    %97 = vector.broadcast %81 : vector<1x128xf32> to vector<128x128xf32>
    %98 = arith.mulf %96, %97 : vector<128x128xf32>
    %cst_52 = arith.constant dense<0.000000e+00> : vector<128xf32>
    %99 = vector.multi_reduction <add>, %98, %cst_52 [1] : vector<128x128xf32> to vector<128xf32>
    %100 = vector.shape_cast %99 : vector<128xf32> to vector<128x1xf32>
    %cst_53 = arith.constant dense<0.000000e+00> : vector<128xf32>
    %101 = vector.multi_reduction <add>, %96, %cst_53 [1] : vector<128x128xf32> to vector<128xf32>
    %102 = vector.shape_cast %101 : vector<128xf32> to vector<128x1xf32>
    %103 = arith.divf %100, %102 : vector<128x1xf32>
    %104 = tpu.transpose %103, [1, 0] : vector<128x1xf32> -> vector<1x128xf32>
    %105 = vector.broadcast %67 : f32 to vector<1x128xf32>
    %106 = arith.mulf %105, %104 : vector<1x128xf32>
    %107 = vector.broadcast %68 : f32 to vector<1x128xf32>
    %108 = arith.addf %106, %107 : vector<1x128xf32>
    %109 = arith.addf %60, %108 : vector<1x128xf32>
    %110 = vector.broadcast %83 : vector<32x1xf32> to vector<32x128xf32>
    %111 = vector.broadcast %109 : vector<1x128xf32> to vector<32x128xf32>
    %112 = arith.mulf %110, %111 : vector<32x128xf32>
    %113 = vector.broadcast %85 : vector<32x1xf32> to vector<32x128xf32>
    %114 = arith.addf %112, %113 : vector<32x128xf32>
    %cst_54 = arith.constant 0.000000e+00 : f32
    %115 = vector.broadcast %cst_54 : f32 to vector<32x128xf32>
    %116 = arith.maximumf %114, %115 : vector<32x128xf32>
    %cst_55 = arith.constant dense<0.000000e+00> : vector<1x128xf32>
    %117 = tpu.matmul %87, %116, %cst_55 {dimension_numbers = #tpu.dot_dimension_numbers<[1], [0], [0], [1], [0, 0, 1, 1], [], []>} : vector<1x32xf32>, vector<32x128xf32>, vector<1x128xf32> -> vector<1x128xf32>
    %118 = arith.addf %109, %117 : vector<1x128xf32>
    %119 = vector.broadcast %69 : f32 to vector<1x128xf32>
    %120 = arith.addf %118, %119 : vector<1x128xf32>
    %121 = arith.negf %120 : vector<1x128xf32>
    %122 = math.exp %121 : vector<1x128xf32>
    %cst_56 = arith.constant 1.000000e+00 : f32
    %123 = vector.broadcast %cst_56 : f32 to vector<1x128xf32>
    %124 = arith.addf %123, %122 : vector<1x128xf32>
    %125 = arith.divf %123, %124 : vector<1x128xf32>
    %c0_57 = arith.constant 0 : index
    %c0_58 = arith.constant 0 : index
    %126 = vector.load %arg6[%c0_57, %c0_58] : memref<1x128xf32, #tpu.memory_space<vmem>>, vector<1x128xf32>
    tpu.vector_store %arg6[%c0_57, %c0_58], %125 {strides = array<i32>} : memref<1x128xf32, #tpu.memory_space<vmem>>, vector<1x128xf32>,
    return
  }
}

</mosaic_0001>

<bundles_post_ra>
// kernel: tpu_custom_call.1
= control target key start
LH: loop header
LB: loop body
LE: loop exit
PB: predicated region body
PF: predicated region fallthrough
CT: control target
= control target key end

     0   :  { %12 = vsyncpa [#allocation5], 0  ;;  %s2075_s0 = inlined_call_operand.<no memory space> [shape: s32[1], index: 0, kind: input, shape index: {}]   ;;  %s2076_s1 = inlined_call_operand.vmem [shape: f32[2,16], index: 1, kind: input, shape index: {}]   ;;  %s2077_s2 = inlined_call_operand.vmem [shape: f32[1,128], index: 2, kind: input, shape index: {}]   ;;  %s2078_s3 = inlined_call_operand.vmem [shape: f32[2,32,1], index: 3, kind: input, shape index: {}]   ;;  %s2079_s4 = inlined_call_operand.vmem [shape: f32[2,32,1], index: 4, kind: input, shape index: {}]   ;;  %s2080_s5 = inlined_call_operand.vmem [shape: f32[2,1,32], index: 5, kind: input, shape index: {}]   ;;  %s2081_s6 = inlined_call_operand.hbm [shape: f32[1,128], index: 6, kind: output, shape index: {}]  }
   0x1   :  { %13 = vsyncpa [#allocation4], 0  ;;  %s21_s22 = sshll.u32 %s2076_s1, 4  ;;  %s1653_s23 = smov [#allocation3]   ;;  %s22_s22 = int_to_ptr.vmem [resolvable:$true] %s21_s22 }
   0x2   :  { %24 = dma.vmem_to_smem %s22_s22, 32, %s1653_s23, [#allocation5]  }
   0x3   :  { %1649 = dma.done.wait [#allocation5], 32  }
   0x4   :  { %1650 = vsyncadd [#allocation5], 4294967264 }
   0x5   :  { %37 = sfence }
   0x6   :  { %s39_s24 = sld [smem:[#allocation3]]  ;;  %v62_v0 = vld [vmem:[%s2078_s3 + $0x10] sm:$0xff]  ;;  %v1654_v1 = vmov 0   ;;  %v63_v2 = vld [vmem:[%s2078_s3 + $0x18] sm:$0xff]  ;;  %v1703_v3 = vld [vmem:[%s2077_s2] sm:$0x1] }
   0x7   :  { %1479 = vset.pattern.permute.xlu1 %v1654_v1  ;;  %1478 = vset.pattern.permute.xlu2 %v1654_v1  ;;  %s1446_s1 = sld [smem:[#allocation3 + $0x3]]  ;;  %v61_v6 = vld [vmem:[%s2078_s3 + $0x8] sm:$0xff]  ;;  %v60_v9 = vld [vmem:[%s2078_s3] sm:$0xff]  ;;  %v67_v10 = vld [vmem:[%s2079_s4 + $0x18] sm:$0xff] }
   0x8   :  { %652 = vperm.xlu1 %1479, %v62_v0   ;;  %657 = vperm.xlu2 %1478, %v63_v2   ;;  %v64_v11 = vld [vmem:[%s2079_s4] sm:$0xff]  ;;  %v66_v12 = vld [vmem:[%s2079_s4 + $0x10] sm:$0xff]  ;;  %v65_v13 = vld [vmem:[%s2079_s4 + $0x8] sm:$0xff]  ;;  %s1444_s26 = sld [smem:[#allocation3 + $0x1]] }
   0x9   :  { %v1464_v14 = vld [vmem:[%s2078_s3 + $0x30] sm:$0xff]  ;;  %v1469_v18 = vld [vmem:[%s2079_s4 + $0x38] sm:$0xff]  ;;  %v1463_v27 = vld [vmem:[%s2078_s3 + $0x28] sm:$0xff]  ;;  %s1447_s27 = sld [smem:[#allocation3 + $0x4]] }
   0xa   :  { %v1465_v25 = vld [vmem:[%s2078_s3 + $0x38] sm:$0xff]  ;;  %s1445_s28 = sld [smem:[#allocation3 + $0x2]] }
   0xb   :  { %s1449_s29 = sld [smem:[#allocation3 + $0x6]] }
   0xc   :  { %v48_v4 = vstv %s39_s24  ;;  %s1450_s30 = sld [smem:[#allocation3 + $0x7]] }
   0xd   :  { %v49_v5 = vmul.f32 %v48_v4, %v1703_v3  ;;  %v50_v7 = vstv %s1446_s1  ;;  %s1448_s1 = sld [smem:[#allocation3 + $0x5]] }
   0xe   :  { %v52_v42 = vstv %s1444_s26  ;;  %s1451_s10 = sld [smem:[#allocation3 + $0x8]] }
   0xf   :  { %v51_v8 = vadd.f32 %v50_v7, %v49_v5  ;;  %v53_v44 = vmul.f32 %v52_v42, %v1703_v3  ;;  %v54_v45 = vstv %s1447_s27  ;;  %s1453_s11 = sld [smem:[#allocation3 + $0x80]] }
  0x10   :  { %647 = vperm.xlu1 %1479, %v61_v6   ;;  %684 = vperm.xlu2 %1478, %v67_v10   ;;  %s1456_s12 = sld [smem:[#allocation3 + $0x83]] }
  0x11   :  { %69 = vxpose.xlu0.b32.start.end [1/1] (short) %v51_v8, 128  ;;  %v55_v47 = vadd.f32 %v54_v45, %v53_v44  ;;  %s1454_s13 = sld [smem:[#allocation3 + $0x81]] }
  0x12   :  { %s1457_s14 = sld [smem:[#allocation3 + $0x84]] }
  0x13   :  { %v182_v48 = vperm.slane %v55_v47, 0  ;;  %s1455_s15 = sld [smem:[#allocation3 + $0x82]] }
  0x14   :  { %s1458_s16 = sld [smem:[#allocation3 + $0x85]] }
  0x15   :  { %s1460_s23 = sld [smem:[#allocation3 + $0x87]] }
  0x16   :  { %s1461_s26 = sld [smem:[#allocation3 + $0x88]] }
  0x18   :  { %642 = vperm.xlu1 %1479, %v60_v9   ;;  %679 = vperm.xlu2 %1478, %v66_v12  }
  0x20   :  { %669 = vperm.xlu1 %1479, %v64_v11   ;;  %674 = vperm.xlu2 %1478, %v65_v13  }
  0x28   :  { %1338 = vperm.xlu2 %1478, %v1464_v14  }
  0x62   :  { %v1736_v31 = vpop.permute.xlu2 %657 }
  0x6a   :  { %v1738_v34 = vpop.permute.xlu2 %684 }
  0x72   :  { %v1742_v37 = vpop.permute.xlu2 %679 }
  0x78   :  { %1477 = vset.pattern.permute.xlu0 %v1654_v1 }
  0x7a   :  { %v1740_v35 = vpop.permute.xlu1 %652  ;;  %v1746_v39 = vpop.permute.xlu2 %674 }
  0x82   :  { %v1744_v38 = vpop.permute.xlu1 %647  ;;  %v1750_v41 = vpop.permute.xlu2 %1338 }
  0x8a   :  { %v1748_v40 = vpop.permute.xlu1 %642 }
  0x92   :  { %v1752_v43 = vpop.permute.xlu1 %669 }
  0xb5   :  { %v85_v15 = vpop.trf.xlu0 }
  0xbd   :  { %v86_v16 = vpop.trf.xlu0 }
  0xbe   :  { %108 = vperm.xlu1 %1479, %v86_v16  }
  0xc5   :  { %v87_v17 = vpop.trf.xlu0 }
  0xc6   :  { %113 = vperm.xlu1 %1479, %v87_v17  }
  0xcd   :  { %v88_v19 = vpop.trf.xlu0 }
  0xce   :  { %1370 = vperm.xlu1 %1479, %v1469_v18   ;;  %118 = vperm.xlu2 %1478, %v88_v19  }
  0xd5   :  { %v89_v20 = vpop.trf.xlu0 }
  0xd6   :  { %123 = vperm.xlu2 %1478, %v89_v20   ;;  %v56_v20 = vstv %s1445_s28 }
  0xdd   :  { %v90_v21 = vpop.trf.xlu0 }
  0xde   :  { %128 = vperm.xlu1 %1479, %v90_v21  }
  0xe5   :  { %v91_v22 = vpop.trf.xlu0 }
  0xe6   :  { %133 = vperm.xlu2 %1478, %v91_v22   ;;  %v57_v22 = vmul.f32 %v56_v20, %v1703_v3 }
  0xed   :  { %v92_v23 = vpop.trf.xlu0 }
  0xee   :  { %138 = vperm.xlu1 %1479, %v92_v23   ;;  %v58_v23 = vstv %s1448_s1 }
  0xf5   :  { %v93_v24 = vpop.trf.xlu0 }
  0xf6   :  { %143 = vperm.xlu2 %1478, %v93_v24   ;;  %v59_v24 = vadd.f32 %v58_v23, %v57_v22 }
  0xf7   :  { %103 = vperm.xlu0 %1477, %v85_v15  }
  0xfd   :  { %v94_v26 = vpop.trf.xlu0 }
  0xfe   :  { %148 = vperm.xlu1 %1479, %v94_v26   ;;  %v1791_v26 = vperm.slane %v59_v24, 0 }
  0xff   :  { %1343 = vperm.xlu0 %1477, %v1465_v25  }
 0x105   :  { %v95_v28 = vpop.trf.xlu0 }
 0x106   :  { %153 = vperm.xlu2 %1478, %v95_v28  }
 0x107   :  { %1333 = vperm.xlu0 %1477, %v1463_v27  }
 0x10d   :  { %v96_v29 = vpop.trf.xlu0 }
 0x10e   :  { %158 = vperm.xlu1 %1479, %v96_v29  }
 0x115   :  { %v97_v30 = vpop.trf.xlu0 }
 0x116   :  { %163 = vperm.xlu2 %1478, %v97_v30  }
 0x11d   :  { %v98_v32 = vpop.trf.xlu0 }
 0x11e   :  { %168 = vperm.xlu1 %1479, %v98_v32  }
 0x125   :  { %v99_v33 = vpop.trf.xlu0 }
 0x126   :  { %173 = vperm.xlu2 %1478, %v99_v33  }
 0x128   :  { %v119_v46 = vpop.permute.xlu2 %118 }
 0x129   :  { %v187_v0 = vmul.f32 %v182_v48, %v119_v46 }
 0x12d   :  { %v100_v36 = vpop.trf.xlu0 }
 0x12e   :  { %178 = vperm.xlu1 %1479, %v100_v36  }
 0x130   :  { %v109_v49 = vpop.permute.xlu1 %108  ;;  %v124_v51 = vpop.permute.xlu2 %123 }
 0x131   :  { %v185_v50 = vmul.f32 %v182_v48, %v109_v49  ;;  %v1755_v52 = vmul.f32 %v182_v48, %v124_v51 }
 0x138   :  { %v114_v57 = vpop.permute.xlu1 %113 }
 0x139   :  { %v186_v60 = vmul.f32 %v182_v48, %v114_v57 }
 0x140   :  { %v134_v53 = vpop.permute.xlu2 %133  ;;  %v1764_v62 = vpop.permute.xlu1 %1370 }
 0x141   :  { %v1758_v54 = vmul.f32 %v182_v48, %v134_v53 }
 0x150   :  { %v144_v58 = vpop.permute.xlu2 %143  ;;  %v129_v4 = vpop.permute.xlu1 %128 }
 0x151   :  { %v1761_v59 = vmul.f32 %v182_v48, %v144_v58  ;;  %v189_v5 = vmul.f32 %v182_v48, %v129_v4 }
 0x158   :  { %202 = vmax.xlane.f32.xlu1 %v185_v50 }
 0x160   :  { %208 = vmax.xlane.f32.xlu1 %v1755_v52  ;;  %v154_v61 = vpop.permute.xlu2 %153  ;;  %v139_v8 = vpop.permute.xlu1 %138 }
 0x161   :  { %v1766_v63 = vmul.f32 %v182_v48, %v154_v61  ;;  %v1775_v9 = vmul.f32 %v182_v48, %v139_v8 }
 0x168   :  { %212 = vmax.xlane.f32.xlu1 %v1758_v54 }
 0x169   :  { %v104_v55 = vpop.permute.xlu0 %103 }
 0x16a   :  { %v184_v56 = vmul.f32 %v182_v48, %v104_v55 }
 0x16c   :  { %200 = vmax.xlane.f32.xlu2 %v184_v56 }
 0x170   :  { %216 = vmax.xlane.f32.xlu1 %v1761_v59  ;;  %v164_v1 = vpop.permute.xlu2 %163  ;;  %v149_v10 = vpop.permute.xlu1 %148 }
 0x171   :  { %v1769_v2 = vmul.f32 %v182_v48, %v164_v1  ;;  %v1778_v11 = vmul.f32 %v182_v48, %v149_v10 }
 0x174   :  { %204 = vmax.xlane.f32.xlu2 %v186_v60 }
 0x178   :  { %220 = vmax.xlane.f32.xlu1 %v1766_v63 }
 0x17c   :  { %206 = vmax.xlane.f32.xlu2 %v187_v0 }
 0x180   :  { %224 = vmax.xlane.f32.xlu1 %v1769_v2  ;;  %v174_v6 = vpop.permute.xlu2 %173  ;;  %v159_v12 = vpop.permute.xlu1 %158 }
 0x181   :  { %v1772_v7 = vmul.f32 %v182_v48, %v174_v6  ;;  %v1781_v13 = vmul.f32 %v182_v48, %v159_v12 }
 0x184   :  { %210 = vmax.xlane.f32.xlu2 %v189_v5 }
 0x188   :  { %228 = vmax.xlane.f32.xlu1 %v1772_v7 }
 0x18c   :  { %214 = vmax.xlane.f32.xlu2 %v1775_v9 }
 0x190   :  { %v169_v14 = vpop.permute.xlu1 %168 }
 0x191   :  { %v1784_v15 = vmul.f32 %v182_v48, %v169_v14 }
 0x194   :  { %218 = vmax.xlane.f32.xlu2 %v1778_v11 }
 0x19c   :  { %222 = vmax.xlane.f32.xlu2 %v1781_v13 }
 0x1a0   :  { %v179_v16 = vpop.permute.xlu1 %178 }
 0x1a1   :  { %v1787_v17 = vmul.f32 %v182_v48, %v179_v16 }
 0x1a4   :  { %226 = vmax.xlane.f32.xlu2 %v1784_v15 }
 0x1ac   :  { %230 = vmax.xlane.f32.xlu2 %v1787_v17 }
 0x1cb   :  { %v203_v18 = vpop.xlane.xlu1 %202 }
 0x1cc   :  { %v233_v19 = vsub.f32 %v185_v50, %v203_v18 }
 0x1ce   :  { %v250_v21 = vmul.f32 1.442695, %v233_v19 }
 0x1d0   :  { %1480 = vpow2.f32 %v250_v21 }
 0x1d3   :  { %v209_v48 = vpop.xlane.xlu1 %208 }
 0x1d4   :  { %v236_v51 = vsub.f32 %v1755_v52, %v209_v48 }
 0x1d6   :  { %v1481_v25 = vpop.eup %1480  ;;  %v256_v55 = vmul.f32 1.442695, %v236_v51 }
 0x1d7   :  { %333 = vadd.xlane.f32.xlu2 %v1481_v25  ;;  %v284_v27 = vmul.f32 %v1481_v25, %v1791_v26 }
 0x1df   :  { %301 = vadd.xlane.f32.xlu2 %v284_v27  ;;  %v201_v28 = vpop.xlane.xlu2 %200 }
 0x1e0   :  { %v232_v29 = vsub.f32 %v184_v56, %v201_v28 }
 0x1e2   :  { %v248_v30 = vmul.f32 1.442695, %v232_v29 }
 0x1e4   :  { %1482 = vpow2.f32 %v248_v30 }
 0x1e7   :  { %v205_v32 = vpop.xlane.xlu2 %204 }
 0x1e8   :  { %v234_v36 = vsub.f32 %v186_v60, %v205_v32 }
 0x1ea   :  { %v1483_v33 = vpop.eup %1482  ;;  %v252_v42 = vmul.f32 1.442695, %v234_v36 }
 0x1eb   :  { %331 = vadd.xlane.f32.xlu1 %v1483_v33  ;;  %v283_v45 = vmul.f32 %v1483_v33, %v1791_v26 }
 0x1ec   :  { %1484 = vpow2.f32 %v252_v42 }
 0x1ef   :  { %v207_v44 = vpop.xlane.xlu2 %206 }
 0x1f0   :  { %v235_v3 = vsub.f32 %v187_v0, %v207_v44  ;;  %v213_v0 = vpop.xlane.xlu1 %212 }
 0x1f1   :  { %v238_v52 = vsub.f32 %v1758_v54, %v213_v0 }
 0x1f2   :  { %v254_v46 = vmul.f32 1.442695, %v235_v3  ;;  %v1485_v49 = vpop.eup %1484 }
 0x1f3   :  { %299 = vadd.xlane.f32.xlu1 %v283_v45  ;;  %v285_v58 = vmul.f32 %v1485_v49, %v1791_v26  ;;  %v260_v6 = vmul.f32 1.442695, %v238_v52 }
 0x1f4   :  { %1486 = vpow2.f32 %v254_v46 }
 0x1f5   :  { %1488 = vpow2.f32 %v256_v55 }
 0x1f7   :  { %v211_v47 = vpop.xlane.xlu2 %210 }
 0x1f8   :  { %v237_v53 = vsub.f32 %v189_v5, %v211_v47  ;;  %v217_v16 = vpop.xlane.xlu1 %216 }
 0x1f9   :  { %v240_v19 = vsub.f32 %v1761_v59, %v217_v16 }
 0x1fa   :  { %v1487_v50 = vpop.eup %1486  ;;  %v258_v57 = vmul.f32 1.442695, %v237_v53 }
 0x1fb   :  { %335 = vadd.xlane.f32.xlu1 %v1485_v49  ;;  %337 = vadd.xlane.f32.xlu2 %v1487_v50  ;;  %v286_v60 = vmul.f32 %v1487_v50, %v1791_v26  ;;  %v1489_v1 = vpop.eup %1488  ;;  %v264_v22 = vmul.f32 1.442695, %v240_v19 }
 0x1fc   :  { %1490 = vpow2.f32 %v258_v57  ;;  %v287_v12 = vmul.f32 %v1489_v1, %v1791_v26 }
 0x1fd   :  { %1492 = vpow2.f32 %v260_v6 }
 0x1ff   :  { %v215_v56 = vpop.xlane.xlu2 %214 }
 0x200   :  { %v239_v5 = vsub.f32 %v1775_v9, %v215_v56  ;;  %v221_v23 = vpop.xlane.xlu1 %220 }
 0x201   :  { %v242_v28 = vsub.f32 %v1766_v63, %v221_v23 }
 0x202   :  { %v1491_v4 = vpop.eup %1490  ;;  %v262_v10 = vmul.f32 1.442695, %v239_v5 }
 0x203   :  { %303 = vadd.xlane.f32.xlu1 %v285_v58  ;;  %305 = vadd.xlane.f32.xlu2 %v286_v60  ;;  %v288_v14 = vmul.f32 %v1491_v4, %v1791_v26  ;;  %v1493_v20 = vpop.eup %1492  ;;  %v268_v29 = vmul.f32 1.442695, %v242_v28 }
 0x204   :  { %1494 = vpow2.f32 %v262_v10  ;;  %v289_v24 = vmul.f32 %v1493_v20, %v1791_v26 }
 0x207   :  { %v219_v61 = vpop.xlane.xlu2 %218 }
 0x208   :  { %v241_v59 = vsub.f32 %v1778_v11, %v219_v61  ;;  %v225_v63 = vpop.xlane.xlu1 %224 }
 0x209   :  { %v244_v11 = vsub.f32 %v1769_v2, %v225_v63 }
 0x20a   :  { %v1495_v21 = vpop.eup %1494  ;;  %v266_v30 = vmul.f32 1.442695, %v241_v59 }
 0x20b   :  { %339 = vadd.xlane.f32.xlu1 %v1489_v1  ;;  %341 = vadd.xlane.f32.xlu2 %v1491_v4  ;;  %v290_v25 = vmul.f32 %v1495_v21, %v1791_v26  ;;  %v272_v45 = vmul.f32 1.442695, %v244_v11 }
 0x20f   :  { %v223_v8 = vpop.xlane.xlu2 %222 }
 0x210   :  { %v243_v32 = vsub.f32 %v1781_v13, %v223_v8  ;;  %v229_v47 = vpop.xlane.xlu1 %228 }
 0x211   :  { %v246_v50 = vsub.f32 %v1772_v7, %v229_v47 }
 0x212   :  { %v270_v36 = vmul.f32 1.442695, %v243_v32 }
 0x213   :  { %307 = vadd.xlane.f32.xlu1 %v287_v12  ;;  %309 = vadd.xlane.f32.xlu2 %v288_v14  ;;  %v276_v51 = vmul.f32 1.442695, %v246_v50 }
 0x217   :  { %v227_v18 = vpop.xlane.xlu2 %226 }
 0x218   :  { %v245_v54 = vsub.f32 %v1784_v15, %v227_v18 }
 0x21a   :  { %v274_v9 = vmul.f32 1.442695, %v245_v54 }
 0x21b   :  { %343 = vadd.xlane.f32.xlu1 %v1493_v20  ;;  %345 = vadd.xlane.f32.xlu2 %v1495_v21 }
 0x21c   :  { %1496 = vpow2.f32 %v274_v9 }
 0x21d   :  { %1498 = vpow2.f32 %v264_v22 }
 0x21e   :  { %1500 = vpow2.f32 %v268_v29 }
 0x21f   :  { %1502 = vpow2.f32 %v266_v30  ;;  %v231_v53 = vpop.xlane.xlu2 %230 }
 0x220   :  { %1504 = vpow2.f32 %v270_v36  ;;  %v247_v55 = vsub.f32 %v1787_v17, %v231_v53 }
 0x221   :  { %1506 = vpow2.f32 %v272_v45 }
 0x222   :  { %v1497_v27 = vpop.eup %1496  ;;  %1508 = vpow2.f32 %v276_v51  ;;  %v278_v56 = vmul.f32 1.442695, %v247_v55 }
 0x223   :  { %311 = vadd.xlane.f32.xlu1 %v289_v24  ;;  %313 = vadd.xlane.f32.xlu2 %v290_v25  ;;  %v1499_v15 = vpop.eup %1498  ;;  %v296_v2 = vmul.f32 %v1497_v27, %v1791_v26 }
 0x224   :  { %357 = vadd.xlane.f32.xlu0 %v1497_v27  ;;  %v291_v33 = vmul.f32 %v1499_v15, %v1791_v26  ;;  %v1501_v42 = vpop.eup %1500  ;;  %1510 = vpow2.f32 %v278_v56 }
 0x225   :  { %v1503_v44 = vpop.eup %1502  ;;  %v293_v48 = vmul.f32 %v1501_v42, %v1791_v26 }
 0x226   :  { %v1505_v3 = vpop.eup %1504  ;;  %v292_v46 = vmul.f32 %v1503_v44, %v1791_v26 }
 0x227   :  { %v294_v13 = vmul.f32 %v1505_v3, %v1791_v26  ;;  %v1507_v49 = vpop.eup %1506 }
 0x228   :  { %v295_v57 = vmul.f32 %v1507_v49, %v1791_v26  ;;  %v1509_v58 = vpop.eup %1508 }
 0x229   :  { %v297_v7 = vmul.f32 %v1509_v58, %v1791_v26 }
 0x22a   :  { %v1511_v61 = vpop.eup %1510 }
 0x22b   :  { %347 = vadd.xlane.f32.xlu1 %v1499_v15  ;;  %315 = vadd.xlane.f32.xlu2 %v291_v33  ;;  %v298_v4 = vmul.f32 %v1511_v61, %v1791_v26 }
 0x233   :  { %351 = vadd.xlane.f32.xlu1 %v1501_v42  ;;  %349 = vadd.xlane.f32.xlu2 %v1503_v44 }
 0x23b   :  { %317 = vadd.xlane.f32.xlu2 %v292_v46  ;;  %321 = vadd.xlane.f32.xlu1 %v294_v13 }
 0x243   :  { %319 = vadd.xlane.f32.xlu2 %v293_v48  ;;  %355 = vadd.xlane.f32.xlu1 %v1507_v49 }
 0x24a   :  { %v334_v60 = vpop.xlane.xlu2 %333 }
 0x24b   :  { %353 = vadd.xlane.f32.xlu2 %v1505_v3  ;;  %325 = vadd.xlane.f32.xlu1 %v296_v2  ;;  %1512 = vrcp.f32 %v334_v60  ;;  %v389_v23 = vand.u32 2147483648, %v334_v60  ;;  %vm383_vm5 = vweird.f32 %v334_v60  ;;  %v387_v25 = vand.u32 2147483647, %v334_v60 }
 0x24d   :  { %v390_v59 = vor.u32 1.1754944e-38, %v389_v23  ;;  %vm388_vm7 = vcmp.eq.f32.partialorder %v387_v25, 8.507059e+37 }
 0x251   :  { %v1513_v1 = vpop.eup %1512 }
 0x252   :  { %v379_v17 = vmul.f32 %v1513_v1, %v334_v60  ;;  %v302_v6 = vpop.xlane.xlu2 %301  ;;  %vm384_vm3 = vweird.f32 %v1513_v1 }
 0x253   :  { %323 = vadd.xlane.f32.xlu2 %v295_v57  ;;  %359 = vadd.xlane.f32.xlu1 %v1509_v58  ;;  %vm385_vm6 = vmor %vm383_vm5, %vm384_vm3 }
 0x254   :  { %v380_v5 = vsub.f32 1.0, %v379_v17 }
 0x256   :  { %v381_v16 = vmul.f32 %v1513_v1, %v380_v5 }
 0x258   :  { %v382_v21 = vadd.f32 %v1513_v1, %v381_v16 }
 0x25a   :  { %v386_v28 = vsel %vm385_vm6, %v1513_v1, %v382_v21 }
 0x25b   :  { %327 = vadd.xlane.f32.xlu2 %v297_v7  ;;  %361 = vadd.xlane.f32.xlu1 %v1511_v61  ;;  %v391_v29 = vsel %vm388_vm7, %v390_v59, %v386_v28 }
 0x25c   :  { %v392_v63 = vmul.f32 %v391_v29, %v302_v6 }
 0x25e   :  { %v332_v0 = vpop.xlane.xlu1 %331 }
 0x25f   :  { %1514 = vrcp.f32 %v332_v0  ;;  %v374_v14 = vand.u32 2147483648, %v332_v0  ;;  %v372_v19 = vand.u32 2147483647, %v332_v0  ;;  %vm368_vm1 = vweird.f32 %v332_v0 }
 0x261   :  { %v375_v20 = vor.u32 1.1754944e-38, %v374_v14  ;;  %vm373_vm4 = vcmp.eq.f32.partialorder %v372_v19, 8.507059e+37 }
 0x263   :  { %329 = vadd.xlane.f32.xlu1 %v298_v4 }
 0x265   :  { %v1515_v52 = vpop.eup %1514 }
 0x266   :  { %v364_v8 = vmul.f32 %v1515_v52, %v332_v0  ;;  %v300_v10 = vpop.xlane.xlu1 %299  ;;  %vm369_vm0 = vweird.f32 %v1515_v52 }
 0x267   :  { %vm370_vm2 = vmor %vm368_vm1, %vm369_vm0 }
 0x268   :  { %v365_v12 = vsub.f32 1.0, %v364_v8 }
 0x26a   :  { %v366_v18 = vmul.f32 %v1515_v52, %v365_v12 }
 0x26c   :  { %v367_v54 = vadd.f32 %v1515_v52, %v366_v18 }
 0x26e   :  { %v371_v26 = vsel %vm370_vm2, %v1515_v52, %v367_v54  ;;  %v336_v9 = vpop.xlane.xlu1 %335  ;;  %v338_v22 = vpop.xlane.xlu2 %337 }
 0x26f   :  { %v376_v24 = vsel %vm373_vm4, %v375_v20, %v371_v26  ;;  %1516 = vrcp.f32 %v336_v9  ;;  %v404_v3 = vand.u32 2147483648, %v336_v9  ;;  %v402_v46 = vand.u32 2147483647, %v336_v9 }
 0x270   :  { %v377_v27 = vmul.f32 %v376_v24, %v300_v10  ;;  %1518 = vrcp.f32 %v338_v22  ;;  %vm398_vm9 = vweird.f32 %v336_v9  ;;  %v419_v55 = vand.u32 2147483648, %v338_v22 }
 0x271   :  { %v405_v48 = vor.u32 1.1754944e-38, %v404_v3  ;;  %vm403_vm11 = vcmp.eq.f32.partialorder %v402_v46, 8.507059e+37  ;;  %vm413_vm13 = vweird.f32 %v338_v22  ;;  %v417_v57 = vand.u32 2147483647, %v338_v22 }
 0x272   :  { %603 = vxpose.xlu0.b32.start [1/16] (narrow) %v377_v27, 8  ;;  %v420_v60 = vor.u32 1.1754944e-38, %v419_v55 }
 0x273   :  { %vm418_vm15 = vcmp.eq.f32.partialorder %v417_v57, 8.507059e+37 }
 0x275   :  { %v1517_v15 = vpop.eup %1516 }
 0x276   :  { %v1519_v30 = vpop.eup %1518  ;;  %v394_v32 = vmul.f32 %v1517_v15, %v336_v9  ;;  %v304_v33 = vpop.xlane.xlu1 %303  ;;  %vm399_vm8 = vweird.f32 %v1517_v15 }
 0x277   :  { %v306_v36 = vpop.xlane.xlu2 %305  ;;  %v409_v42 = vmul.f32 %v1519_v30, %v338_v22  ;;  %vm400_vm10 = vmor %vm398_vm9, %vm399_vm8  ;;  %vm414_vm12 = vweird.f32 %v1519_v30 }
 0x278   :  { %v395_v44 = vsub.f32 1.0, %v394_v32  ;;  %vm415_vm14 = vmor %vm413_vm13, %vm414_vm12 }
 0x279   :  { %v410_v11 = vsub.f32 1.0, %v409_v42 }
 0x27a   :  { %v396_v45 = vmul.f32 %v1517_v15, %v395_v44  ;;  %604 = vxpose.xlu0.b32.cont [2/16] (narrow) %v392_v63, 8 }
 0x27b   :  { %v411_v13 = vmul.f32 %v1519_v30, %v410_v11 }
 0x27c   :  { %v397_v47 = vadd.f32 %v1517_v15, %v396_v45 }
 0x27d   :  { %v412_v50 = vadd.f32 %v1519_v30, %v411_v13 }
 0x27e   :  { %v401_v49 = vsel %vm400_vm10, %v1517_v15, %v397_v47  ;;  %v340_v51 = vpop.xlane.xlu1 %339 }
 0x27f   :  { %v342_v53 = vpop.xlane.xlu2 %341  ;;  %v406_v2 = vsel %vm403_vm11, %v405_v48, %v401_v49  ;;  %1520 = vrcp.f32 %v340_v51  ;;  %v416_v58 = vsel %vm415_vm14, %v1519_v30, %v412_v50  ;;  %v434_v10 = vand.u32 2147483648, %v340_v51 }
 0x280   :  { %v407_v56 = vmul.f32 %v406_v2, %v304_v33  ;;  %1522 = vrcp.f32 %v342_v53  ;;  %v421_v61 = vsel %vm418_vm15, %v420_v60, %v416_v58  ;;  %v432_v14 = vand.u32 2147483647, %v340_v51 }
 0x281   :  { %v422_v5 = vmul.f32 %v421_v61, %v306_v36  ;;  %vm428_vm1 = vweird.f32 %v340_v51  ;;  %v435_v19 = vor.u32 1.1754944e-38, %v434_v10  ;;  %v449_v22 = vand.u32 2147483648, %v342_v53  ;;  %v1820_v10 = vpop.permute.xlu0 %1343 }
 0x282   :  { %605 = vxpose.xlu0.b32.cont [3/16] (narrow) %v407_v56, 8  ;;  %vm433_vm3 = vcmp.eq.f32.partialorder %v432_v14, 8.507059e+37  ;;  %vm443_vm5 = vweird.f32 %v342_v53  ;;  %v447_v24 = vand.u32 2147483647, %v342_v53 }
 0x283   :  { %v450_v27 = vor.u32 1.1754944e-38, %v449_v22 }
 0x284   :  { %vm448_vm7 = vcmp.eq.f32.partialorder %v447_v24, 8.507059e+37 }
 0x285   :  { %v1521_v7 = vpop.eup %1520 }
 0x286   :  { %v1523_v0 = vpop.eup %1522  ;;  %v424_v1 = vmul.f32 %v1521_v7, %v340_v51  ;;  %v308_v4 = vpop.xlane.xlu1 %307  ;;  %vm429_vm0 = vweird.f32 %v1521_v7 }
 0x287   :  { %v310_v17 = vpop.xlane.xlu2 %309  ;;  %v439_v52 = vmul.f32 %v1523_v0, %v342_v53  ;;  %vm430_vm2 = vmor %vm428_vm1, %vm429_vm0  ;;  %vm444_vm4 = vweird.f32 %v1523_v0 }
 0x288   :  { %v425_v6 = vsub.f32 1.0, %v424_v1  ;;  %vm445_vm6 = vmor %vm443_vm5, %vm444_vm4 }
 0x289   :  { %v440_v8 = vsub.f32 1.0, %v439_v52 }
 0x28a   :  { %v426_v12 = vmul.f32 %v1521_v7, %v425_v6  ;;  %606 = vxpose.xlu0.b32.cont [4/16] (narrow) %v422_v5, 8 }
 0x28b   :  { %v441_v16 = vmul.f32 %v1523_v0, %v440_v8 }
 0x28c   :  { %v427_v18 = vadd.f32 %v1521_v7, %v426_v12 }
 0x28d   :  { %v442_v20 = vadd.f32 %v1523_v0, %v441_v16 }
 0x28e   :  { %v431_v54 = vsel %vm430_vm2, %v1521_v7, %v427_v18  ;;  %v344_v21 = vpop.xlane.xlu1 %343 }
 0x28f   :  { %v346_v26 = vpop.xlane.xlu2 %345  ;;  %v436_v9 = vsel %vm433_vm3, %v435_v19, %v431_v54  ;;  %1524 = vrcp.f32 %v344_v21  ;;  %v446_v25 = vsel %vm445_vm6, %v1523_v0, %v442_v20  ;;  %v464_v44 = vand.u32 2147483648, %v344_v21 }
 0x290   :  { %v437_v23 = vmul.f32 %v436_v9, %v308_v4  ;;  %1526 = vrcp.f32 %v346_v26  ;;  %v451_v59 = vsel %vm448_vm7, %v450_v27, %v446_v25  ;;  %v462_v3 = vand.u32 2147483647, %v344_v21 }
 0x291   :  { %v452_v36 = vmul.f32 %v451_v59, %v310_v17  ;;  %vm458_vm9 = vweird.f32 %v344_v21  ;;  %v465_v13 = vor.u32 1.1754944e-38, %v464_v44  ;;  %v479_v53 = vand.u32 2147483648, %v346_v26 }
 0x292   :  { %607 = vxpose.xlu0.b32.cont [5/16] (narrow) %v437_v23, 8  ;;  %vm463_vm11 = vcmp.eq.f32.partialorder %v462_v3, 8.507059e+37  ;;  %vm473_vm13 = vweird.f32 %v346_v26  ;;  %v477_v55 = vand.u32 2147483647, %v346_v26 }
 0x293   :  { %v480_v57 = vor.u32 1.1754944e-38, %v479_v53 }
 0x294   :  { %vm478_vm15 = vcmp.eq.f32.partialorder %v477_v55, 8.507059e+37 }
 0x295   :  { %v1525_v28 = vpop.eup %1524 }
 0x296   :  { %v1527_v15 = vpop.eup %1526  ;;  %v454_v29 = vmul.f32 %v1525_v28, %v344_v21  ;;  %v312_v30 = vpop.xlane.xlu1 %311  ;;  %vm459_vm8 = vweird.f32 %v1525_v28 }
 0x297   :  { %v314_v32 = vpop.xlane.xlu2 %313  ;;  %v469_v33 = vmul.f32 %v1527_v15, %v346_v26  ;;  %vm460_vm10 = vmor %vm458_vm9, %vm459_vm8  ;;  %vm474_vm12 = vweird.f32 %v1527_v15 }
 0x298   :  { %v455_v42 = vsub.f32 1.0, %v454_v29  ;;  %vm475_vm14 = vmor %vm473_vm13, %vm474_vm12 }
 0x299   :  { %v470_v63 = vsub.f32 1.0, %v469_v33  ;;  %v1826_v33 = vpop.permute.xlu0 %1333 }
 0x29a   :  { %v456_v11 = vmul.f32 %v1525_v28, %v455_v42  ;;  %608 = vxpose.xlu0.b32.cont [6/16] (narrow) %v452_v36, 8 }
 0x29b   :  { %v471_v45 = vmul.f32 %v1527_v15, %v470_v63 }
 0x29c   :  { %v457_v46 = vadd.f32 %v1525_v28, %v456_v11 }
 0x29d   :  { %v472_v48 = vadd.f32 %v1527_v15, %v471_v45 }
 0x29e   :  { %v461_v47 = vsel %vm460_vm10, %v1525_v28, %v457_v46  ;;  %v348_v49 = vpop.xlane.xlu1 %347 }
 0x29f   :  { %v316_v50 = vpop.xlane.xlu2 %315  ;;  %v466_v51 = vsel %vm463_vm11, %v465_v13, %v461_v47  ;;  %1528 = vrcp.f32 %v348_v49  ;;  %v476_v56 = vsel %vm475_vm14, %v1527_v15, %v472_v48  ;;  %v494_v17 = vand.u32 2147483648, %v348_v49 }
 0x2a0   :  { %v467_v2 = vmul.f32 %v466_v51, %v312_v30  ;;  %v481_v60 = vsel %vm478_vm15, %v480_v57, %v476_v56  ;;  %v492_v5 = vand.u32 2147483647, %v348_v49  ;;  %vm488_vm1 = vweird.f32 %v348_v49 }
 0x2a1   :  { %v482_v1 = vmul.f32 %v481_v60, %v314_v32  ;;  %v495_v12 = vor.u32 1.1754944e-38, %v494_v17  ;;  %v358_v48 = vpop.xlane.xlu0 %357 }
 0x2a2   :  { %609 = vxpose.xlu0.b32.cont [7/16] (narrow) %v467_v2, 8  ;;  %vm493_vm3 = vcmp.eq.f32.partialorder %v492_v5, 8.507059e+37 }
 0x2a5   :  { %v1529_v58 = vpop.eup %1528 }
 0x2a6   :  { %v484_v7 = vmul.f32 %v1529_v58, %v348_v49  ;;  %v352_v61 = vpop.xlane.xlu1 %351  ;;  %vm489_vm0 = vweird.f32 %v1529_v58 }
 0x2a7   :  { %v350_v0 = vpop.xlane.xlu2 %349  ;;  %1530 = vrcp.f32 %v352_v61  ;;  %vm490_vm2 = vmor %vm488_vm1, %vm489_vm0  ;;  %v524_v42 = vand.u32 2147483648, %v352_v61  ;;  %vm518_vm9 = vweird.f32 %v352_v61  ;;  %v522_v44 = vand.u32 2147483647, %v352_v61 }
 0x2a8   :  { %v485_v4 = vsub.f32 1.0, %v484_v7  ;;  %1532 = vrcp.f32 %v350_v0  ;;  %v509_v23 = vand.u32 2147483648, %v350_v0  ;;  %v507_v25 = vand.u32 2147483647, %v350_v0 }
 0x2a9   :  { %vm503_vm5 = vweird.f32 %v350_v0  ;;  %v525_v3 = vor.u32 1.1754944e-38, %v524_v42  ;;  %vm523_vm11 = vcmp.eq.f32.partialorder %v522_v44, 8.507059e+37 }
 0x2aa   :  { %v486_v52 = vmul.f32 %v1529_v58, %v485_v4  ;;  %610 = vxpose.xlu0.b32.cont [8/16] (narrow) %v482_v1, 8  ;;  %v510_v59 = vor.u32 1.1754944e-38, %v509_v23  ;;  %vm508_vm7 = vcmp.eq.f32.partialorder %v507_v25, 8.507059e+37 }
 0x2ac   :  { %v487_v6 = vadd.f32 %v1529_v58, %v486_v52 }
 0x2ad   :  { %v1531_v8 = vpop.eup %1530 }
 0x2ae   :  { %v1533_v14 = vpop.eup %1532  ;;  %v491_v16 = vsel %vm490_vm2, %v1529_v58, %v487_v6  ;;  %v514_v18 = vmul.f32 %v1531_v8, %v352_v61  ;;  %v1822_v19 = vpop.xlane.xlu1 %321  ;;  %vm519_vm8 = vweird.f32 %v1531_v8 }
 0x2af   :  { %v318_v54 = vpop.xlane.xlu2 %317  ;;  %v496_v20 = vsel %vm493_vm3, %v495_v12, %v491_v16  ;;  %v499_v21 = vmul.f32 %v1533_v14, %v350_v0  ;;  %vm504_vm4 = vweird.f32 %v1533_v14  ;;  %vm520_vm10 = vmor %vm518_vm9, %vm519_vm8 }
 0x2b0   :  { %v497_v26 = vmul.f32 %v496_v20, %v316_v50  ;;  %v515_v9 = vsub.f32 1.0, %v514_v18  ;;  %vm505_vm6 = vmor %vm503_vm5, %vm504_vm4  ;;  %vm563_vm5 = vweird.f32 %v358_v48 }
 0x2b1   :  { %v500_v22 = vsub.f32 1.0, %v499_v21 }
 0x2b2   :  { %611 = vxpose.xlu0.b32.cont [9/16] (narrow) %v497_v26, 8  ;;  %v516_v27 = vmul.f32 %v1531_v8, %v515_v9 }
 0x2b3   :  { %v501_v24 = vmul.f32 %v1533_v14, %v500_v22 }
 0x2b4   :  { %v517_v32 = vadd.f32 %v1531_v8, %v516_v27 }
 0x2b5   :  { %v502_v28 = vadd.f32 %v1533_v14, %v501_v24 }
 0x2b6   :  { %v1824_v15 = vpop.xlane.xlu1 %355  ;;  %v521_v11 = vsel %vm520_vm10, %v1531_v8, %v517_v32 }
 0x2b7   :  { %v320_v29 = vpop.xlane.xlu2 %319  ;;  %v506_v30 = vsel %vm505_vm6, %v1533_v14, %v502_v28  ;;  %1534 = vrcp.f32 %v1824_v15  ;;  %v526_v45 = vsel %vm523_vm11, %v525_v3, %v521_v11  ;;  %v554_v12 = vand.u32 2147483648, %v1824_v15 }
 0x2b8   :  { %v511_v36 = vsel %vm508_vm7, %v510_v59, %v506_v30  ;;  %v527_v49 = vmul.f32 %v526_v45, %v320_v29  ;;  %vm548_vm1 = vweird.f32 %v1824_v15  ;;  %v552_v16 = vand.u32 2147483647, %v1824_v15 }
 0x2b9   :  { %v512_v63 = vmul.f32 %v511_v36, %v318_v54  ;;  %v555_v21 = vor.u32 1.1754944e-38, %v554_v12  ;;  %v569_v28 = vand.u32 2147483648, %v358_v48  ;;  %v567_v59 = vand.u32 2147483647, %v358_v48 }
 0x2ba   :  { %vm553_vm3 = vcmp.eq.f32.partialorder %v552_v16, 8.507059e+37 }
 0x2bb   :  { %612 = vxpose.xlu0.b32.cont [10/16] (narrow) %v512_v63, 8  ;;  %v570_v30 = vor.u32 1.1754944e-38, %v569_v28  ;;  %vm568_vm7 = vcmp.eq.f32.partialorder %v567_v59, 8.507059e+37 }
 0x2bd   :  { %v1535_v47 = vpop.eup %1534 }
 0x2be   :  { %v1829_v46 = vpop.xlane.xlu1 %325  ;;  %v544_v50 = vmul.f32 %v1535_v47, %v1824_v15  ;;  %vm549_vm0 = vweird.f32 %v1535_v47 }
 0x2bf   :  { %v354_v13 = vpop.xlane.xlu2 %353  ;;  %vm550_vm2 = vmor %vm548_vm1, %vm549_vm0  ;;  %vm695_vm0 = vcmask 261120  }
 0x2c0   :  { %1536 = vrcp.f32 %v354_v13  ;;  %v545_v53 = vsub.f32 1.0, %v544_v50  ;;  %v539_v58 = vand.u32 2147483648, %v354_v13  ;;  %v537_v7 = vand.u32 2147483647, %v354_v13 }
 0x2c1   :  { %1538 = vrcp.f32 %v358_v48  ;;  %vm533_vm13 = vweird.f32 %v354_v13 }
 0x2c2   :  { %v546_v61 = vmul.f32 %v1535_v47, %v545_v53  ;;  %v540_v4 = vor.u32 1.1754944e-38, %v539_v58  ;;  %vm538_vm15 = vcmp.eq.f32.partialorder %v537_v7, 8.507059e+37  ;;  %v635_v58 = vstv %s1449_s29  ;;  %s1434_s29 = sshll.u32 %s2081_s6, 4  ;;  %s1435_s29 = int_to_ptr.hbm [resolvable:$true] %s1434_s29 }
 0x2c3   :  { %613 = vxpose.xlu0.b32.cont [11/16] (narrow) %v527_v49, 8 }
 0x2c4   :  { %v547_v52 = vadd.f32 %v1535_v47, %v546_v61 }
 0x2c6   :  { %v1537_v51 = vpop.eup %1536  ;;  %v1832_v55 = vpop.xlane.xlu1 %359  ;;  %v551_v20 = vsel %vm550_vm2, %v1535_v47, %v547_v52 }
 0x2c7   :  { %v529_v2 = vmul.f32 %v1537_v51, %v354_v13  ;;  %v1539_v57 = vpop.eup %1538  ;;  %1540 = vrcp.f32 %v1832_v55  ;;  %vm534_vm12 = vweird.f32 %v1537_v51  ;;  %v556_v9 = vsel %vm553_vm3, %v555_v21, %v551_v20  ;;  %v324_v22 = vpop.xlane.xlu2 %323 }
 0x2c8   :  { %v559_v0 = vmul.f32 %v1539_v57, %v358_v48  ;;  %vm535_vm14 = vmor %vm533_vm13, %vm534_vm12  ;;  %vm564_vm4 = vweird.f32 %v1539_v57  ;;  %v557_v27 = vmul.f32 %v556_v9, %v324_v22  ;;  %v584_v63 = vand.u32 2147483648, %v1832_v55 }
 0x2c9   :  { %v530_v56 = vsub.f32 1.0, %v529_v2  ;;  %vm565_vm6 = vmor %vm563_vm5, %vm564_vm4  ;;  %vm578_vm9 = vweird.f32 %v1832_v55  ;;  %v582_v11 = vand.u32 2147483647, %v1832_v55 }
 0x2ca   :  { %v560_v14 = vsub.f32 1.0, %v559_v0  ;;  %v585_v13 = vor.u32 1.1754944e-38, %v584_v63 }
 0x2cb   :  { %v531_v60 = vmul.f32 %v1537_v51, %v530_v56  ;;  %vm583_vm11 = vcmp.eq.f32.partialorder %v582_v11, 8.507059e+37 }
 0x2cc   :  { %v561_v26 = vmul.f32 %v1539_v57, %v560_v14 }
 0x2cd   :  { %v532_v1 = vadd.f32 %v1537_v51, %v531_v60  ;;  %v1541_v6 = vpop.eup %1540  ;;  %v637_v60 = vstv %s1450_s30 }
 0x2ce   :  { %v362_v5 = vpop.xlane.xlu1 %361  ;;  %v574_v54 = vmul.f32 %v1541_v6, %v1832_v55  ;;  %v562_v25 = vadd.f32 %v1539_v57, %v561_v26  ;;  %vm579_vm8 = vweird.f32 %v1541_v6 }
 0x2cf   :  { %v536_v17 = vsel %vm535_vm14, %v1537_v51, %v532_v1  ;;  %1542 = vrcp.f32 %v362_v5  ;;  %vm580_vm10 = vmor %vm578_vm9, %vm579_vm8  ;;  %v328_v49 = vpop.xlane.xlu2 %327  ;;  %v599_v50 = vand.u32 2147483648, %v362_v5  ;;  %vm593_vm13 = vweird.f32 %v362_v5  ;;  %v1612_v1 = vld [vmem:[%s2077_s2] sm:$0x1] }
 0x2d0   :  { %v541_v8 = vsel %vm538_vm15, %v540_v4, %v536_v17  ;;  %v575_v23 = vsub.f32 1.0, %v574_v54  ;;  %v566_v29 = vsel %vm565_vm6, %v1539_v57, %v562_v25  ;;  %v597_v53 = vand.u32 2147483647, %v362_v5 }
 0x2d1   :  { %v542_v18 = vmul.f32 %v541_v8, %v1822_v19  ;;  %v571_v42 = vsel %vm568_vm7, %v570_v30, %v566_v29  ;;  %v600_v2 = vor.u32 1.1754944e-38, %v599_v50 }
 0x2d2   :  { %v576_v15 = vmul.f32 %v1541_v6, %v575_v23  ;;  %v572_v44 = vmul.f32 %v571_v42, %v1829_v46  ;;  %vm598_vm15 = vcmp.eq.f32.partialorder %v597_v53, 8.507059e+37 }
 0x2d3   :  { %614 = vxpose.xlu0.b32.cont [12/16] (narrow) %v542_v18, 8 }
 0x2d4   :  { %v577_v36 = vadd.f32 %v1541_v6, %v576_v15 }
 0x2d5   :  { %v1543_v24 = vpop.eup %1542 }
 0x2d6   :  { %v589_v19 = vmul.f32 %v1543_v24, %v362_v5  ;;  %v581_v3 = vsel %vm580_vm10, %v1541_v6, %v577_v36  ;;  %vm594_vm12 = vweird.f32 %v1543_v24  ;;  %v330_v56 = vpop.xlane.xlu1 %329 }
 0x2d7   :  { %v586_v47 = vsel %vm583_vm11, %v585_v13, %v581_v3  ;;  %vm595_vm14 = vmor %vm593_vm13, %vm594_vm12  ;;  %v735_v3 = vstv %s1454_s13 }
 0x2d8   :  { %v590_v32 = vsub.f32 1.0, %v589_v19  ;;  %v587_v51 = vmul.f32 %v586_v47, %v328_v49  ;;  %v737_v47 = vstv %s1457_s14 }
 0x2da   :  { %v591_v45 = vmul.f32 %v1543_v24, %v590_v32 }
 0x2db   :  { %615 = vxpose.xlu0.b32.cont [13/16] (narrow) %v557_v27, 8 }
 0x2dc   :  { %v592_v48 = vadd.f32 %v1543_v24, %v591_v45 }
 0x2de   :  { %v596_v46 = vsel %vm595_vm14, %v1543_v24, %v592_v48 }
 0x2df   :  { %v601_v55 = vsel %vm598_vm15, %v600_v2, %v596_v46 }
 0x2e0   :  { %v602_v57 = vmul.f32 %v601_v55, %v330_v56 }
 0x2e3   :  { %616 = vxpose.xlu0.b32.cont [14/16] (narrow) %v572_v44, 8 }
 0x2eb   :  { %617 = vxpose.xlu0.b32.cont [15/16] (narrow) %v587_v51, 8 }
 0x2f3   :  { %618 = vxpose.xlu0.b32.end [16/16] (narrow) %v602_v57, 8 }
 0x31f   :  { %v619_v7 = vpop.trf.xlu0 }
 0x320   :  { %v636_v61 = vmul.f32 %v635_v58, %v619_v7 }
 0x322   :  { %v638_v0 = vadd.f32 %v637_v60, %v636_v61 }
 0x324   :  { %v639_v4 = vadd.f32 %v1612_v1, %v638_v0 }
 0x326   :  { %v661_v17 = vperm.slane %v639_v4, 0 }
 0x328   :  { %v666_v52 = vmul.f32 %v661_v17, %v1736_v31  ;;  %v665_v5 = vmul.f32 %v661_v17, %v1740_v35  ;;  %v664_v6 = vmul.f32 %v661_v17, %v1744_v38  ;;  %v663_v14 = vmul.f32 %v661_v17, %v1748_v40  ;;  %v68_v35 = vld [vmem:[%s2080_s5] sm:$0x1] }
 0x32a   :  { %v690_v8 = vadd.f32 %v1738_v34, %v666_v52  ;;  %v689_v12 = vadd.f32 %v1742_v37, %v665_v5  ;;  %v688_v18 = vadd.f32 %v1746_v39, %v664_v6  ;;  %v687_v20 = vadd.f32 %v1752_v43, %v663_v14 }
 0x32b   :  { %v720_v37 = vstv %s1451_s10  ;;  %v731_v39 = vstv %s1453_s11  ;;  %v733_v43 = vstv %s1456_s12 }
 0x32c   :  { %v694_v16 = vmax.f32 %v690_v8, 0.0  ;;  %v693_v54 = vmax.f32 %v689_v12, 0.0  ;;  %v692_v21 = vmax.f32 %v688_v18, 0.0  ;;  %v691_v31 = vmax.f32 %v687_v20, 0.0 }
 0x32e   :  { %711 = vmatpush.msra.mxu0 %v694_v16 }
 0x330   :  { %712 = vmatpush.msra.mxu0 %v693_v54  ;;  %v739_v54 = vstv %s1455_s15 }
 0x332   :  { %713 = vmatpush.msra.mxu0 %v692_v21 }
 0x334   :  { %714 = vmatpush.msra.mxu0 %v691_v31 }
 0x335   :  { %1452 = vmatmul.msk.f32.vlgmr.msra.gmra.mxu0 %vm695_vm0, %v68_v35 }
 0x3b2   :  { %v716_v34 = vpop.f32.mrf.mxu0 }
 0x3b3   :  { %v719_v38 = vadd.f32 %v716_v34, %v639_v4  ;;  %v741_v34 = vstv %s1458_s16 }
 0x3b5   :  { %v1859_v40 = vadd.f32 %v720_v37, %v719_v38 }
 0x3b7   :  { %v732_v26 = vmul.f32 %v731_v39, %v1859_v40  ;;  %v736_v45 = vmul.f32 %v735_v3, %v1859_v40  ;;  %v740_v35 = vmul.f32 %v739_v54, %v1859_v40 }
 0x3b9   :  { %v734_v9 = vadd.f32 %v733_v43, %v732_v26  ;;  %v738_v48 = vadd.f32 %v737_v47, %v736_v45  ;;  %v742_v38 = vadd.f32 %v741_v34, %v740_v35 }
 0x3bb   :  { %755 = vxpose.xlu2.b32.start.end [1/1] (short) %v734_v9, 128  ;;  %v1863_v49 = vperm.slane %v738_v48, 0  ;;  %v1903_v9 = vperm.slane %v742_v38, 0 }
 0x454   :  { %v771_v22 = vpop.trf.xlu2 }
 0x455   :  { %789 = vperm.xlu1 %1479, %v771_v22  }
 0x45c   :  { %v772_v23 = vpop.trf.xlu2 }
 0x45d   :  { %794 = vperm.xlu1 %1479, %v772_v23  }
 0x464   :  { %v773_v24 = vpop.trf.xlu2 }
 0x465   :  { %799 = vperm.xlu1 %1479, %v773_v24  }
 0x46c   :  { %v774_v25 = vpop.trf.xlu2 }
 0x46d   :  { %804 = vperm.xlu1 %1479, %v774_v25  }
 0x474   :  { %v775_v27 = vpop.trf.xlu2 }
 0x475   :  { %809 = vperm.xlu1 %1479, %v775_v27  }
 0x47c   :  { %v776_v28 = vpop.trf.xlu2 }
 0x484   :  { %v777_v59 = vpop.trf.xlu2 }
 0x485   :  { %819 = vperm.xlu1 %1479, %v777_v59  }
 0x48c   :  { %v778_v19 = vpop.trf.xlu2 }
 0x48d   :  { %824 = vperm.xlu1 %1479, %v778_v19  }
 0x494   :  { %v779_v15 = vpop.trf.xlu2 }
 0x495   :  { %829 = vperm.xlu1 %1479, %v779_v15  }
 0x49c   :  { %814 = vperm.xlu2 %1478, %v776_v28   ;;  %v780_v29 = vpop.trf.xlu2 }
 0x49d   :  { %834 = vperm.xlu1 %1479, %v780_v29  }
 0x4a4   :  { %v781_v30 = vpop.trf.xlu2 }
 0x4a5   :  { %839 = vperm.xlu1 %1479, %v781_v30  }
 0x4ac   :  { %v782_v32 = vpop.trf.xlu2 }
 0x4ad   :  { %844 = vperm.xlu1 %1479, %v782_v32  }
 0x4b4   :  { %v783_v36 = vpop.trf.xlu2 }
 0x4b5   :  { %849 = vperm.xlu1 %1479, %v783_v36  }
 0x4bc   :  { %v784_v42 = vpop.trf.xlu2 }
 0x4bd   :  { %854 = vperm.xlu1 %1479, %v784_v42  }
 0x4c4   :  { %v785_v63 = vpop.trf.xlu2 }
 0x4c5   :  { %859 = vperm.xlu0 %1477, %v785_v63  }
 0x4c7   :  { %v790_v44 = vpop.permute.xlu1 %789 }
 0x4c8   :  { %v870_v50 = vmul.f32 %v1863_v49, %v790_v44 }
 0x4cc   :  { %v786_v55 = vpop.trf.xlu2 }
 0x4cf   :  { %v795_v11 = vpop.permute.xlu1 %794 }
 0x4d0   :  { %v871_v4 = vmul.f32 %v1863_v49, %v795_v11 }
 0x4d7   :  { %v800_v13 = vpop.permute.xlu1 %799 }
 0x4d8   :  { %v872_v52 = vmul.f32 %v1863_v49, %v800_v13 }
 0x4df   :  { %v805_v51 = vpop.permute.xlu1 %804 }
 0x4e0   :  { %v873_v53 = vmul.f32 %v1863_v49, %v805_v51 }
 0x4e7   :  { %886 = vmax.xlane.f32.xlu1 %v870_v50  ;;  %v810_v46 = vpop.permute.xlu1 %809 }
 0x4e8   :  { %v874_v6 = vmul.f32 %v1863_v49, %v810_v46 }
 0x4ef   :  { %892 = vmax.xlane.f32.xlu0 %v873_v53 }
 0x4f6   :  { %v815_v8 = vpop.permute.xlu2 %814 }
 0x4f7   :  { %v820_v2 = vpop.permute.xlu1 %819  ;;  %v1883_v12 = vmul.f32 %v1863_v49, %v815_v8 }
 0x4f8   :  { %v1887_v14 = vmul.f32 %v1863_v49, %v820_v2 }
 0x4ff   :  { %v825_v56 = vpop.permute.xlu1 %824 }
 0x500   :  { %864 = vperm.xlu1 %1479, %v786_v55   ;;  %v1891_v16 = vmul.f32 %v1863_v49, %v825_v56 }
 0x507   :  { %v830_v57 = vpop.permute.xlu1 %829 }
 0x508   :  { %v1895_v18 = vmul.f32 %v1863_v49, %v830_v57 }
 0x50f   :  { %v835_v58 = vpop.permute.xlu1 %834 }
 0x510   :  { %v1900_v39 = vmul.f32 %v1863_v49, %v835_v58 }
 0x517   :  { %v840_v60 = vpop.permute.xlu1 %839 }
 0x518   :  { %v1868_v7 = vmul.f32 %v1863_v49, %v840_v60 }
 0x51a   :  { %906 = vmax.xlane.f32.xlu2 %v1868_v7 }
 0x51f   :  { %v845_v61 = vpop.permute.xlu1 %844 }
 0x520   :  { %v1872_v0 = vmul.f32 %v1863_v49, %v845_v61 }
 0x522   :  { %908 = vmax.xlane.f32.xlu0 %v1872_v0 }
 0x527   :  { %v850_v1 = vpop.permute.xlu1 %849 }
 0x528   :  { %v1907_v25 = vmul.f32 %v1863_v49, %v850_v1 }
 0x52a   :  { %888 = vmax.xlane.f32.xlu1 %v871_v4 }
 0x52f   :  { %v855_v17 = vpop.permute.xlu1 %854 }
 0x530   :  { %v1878_v5 = vmul.f32 %v1863_v49, %v855_v17 }
 0x532   :  { %912 = vmax.xlane.f32.xlu0 %v1878_v5  ;;  %890 = vmax.xlane.f32.xlu1 %v872_v52 }
 0x537   :  { %v860_v20 = vpop.permute.xlu0 %859 }
 0x538   :  { %v1912_v59 = vmul.f32 %v1863_v49, %v860_v20 }
 0x53a   :  { %894 = vmax.xlane.f32.xlu1 %v874_v6 }
 0x542   :  { %896 = vmax.xlane.f32.xlu1 %v1883_v12 }
 0x54a   :  { %898 = vmax.xlane.f32.xlu1 %v1887_v14 }
 0x552   :  { %900 = vmax.xlane.f32.xlu1 %v1891_v16 }
 0x55a   :  { %v887_v21 = vpop.xlane.xlu1 %886  ;;  %902 = vmax.xlane.f32.xlu1 %v1895_v18 }
 0x55b   :  { %v918_v31 = vsub.f32 %v870_v50, %v887_v21 }
 0x55d   :  { %v934_v37 = vmul.f32 1.442695, %v918_v31 }
 0x55f   :  { %1544 = vpow2.f32 %v934_v37 }
 0x562   :  { %v893_v43 = vpop.xlane.xlu0 %892  ;;  %904 = vmax.xlane.f32.xlu1 %v1900_v39 }
 0x563   :  { %v921_v26 = vsub.f32 %v873_v53, %v893_v43 }
 0x565   :  { %v1545_v22 = vpop.eup %1544  ;;  %v940_v23 = vmul.f32 1.442695, %v921_v26 }
 0x566   :  { %v969_v24 = vmul.f32 %v1545_v22, %v1903_v9 }
 0x567   :  { %1546 = vpow2.f32 %v940_v23 }
 0x568   :  { %985 = vadd.xlane.f32.xlu2 %v969_v24 }
 0x56a   :  { %910 = vmax.xlane.f32.xlu1 %v1907_v25 }
 0x56d   :  { %v1547_v27 = vpop.eup %1546 }
 0x56e   :  { %v972_v28 = vmul.f32 %v1547_v27, %v1903_v9 }
 0x570   :  { %991 = vadd.xlane.f32.xlu2 %v972_v28 }
 0x572   :  { %v865_v19 = vpop.permute.xlu1 %864  ;;  %914 = vmax.xlane.f32.xlu1 %v1912_v59 }
 0x573   :  { %v1916_v15 = vmul.f32 %v1863_v49, %v865_v19 }
 0x575   :  { %916 = vmax.xlane.f32.xlu0 %v1916_v15 }
 0x57a   :  { %1017 = vadd.xlane.f32.xlu1 %v1545_v22 }
 0x595   :  { %v909_v37 = vpop.xlane.xlu0 %908 }
 0x59d   :  { %v889_v29 = vpop.xlane.xlu1 %888 }
 0x59e   :  { %v919_v30 = vsub.f32 %v871_v4, %v889_v29 }
 0x5a0   :  { %v936_v32 = vmul.f32 1.442695, %v919_v30 }
 0x5a2   :  { %1548 = vpow2.f32 %v936_v32 }
 0x5a5   :  { %v891_v36 = vpop.xlane.xlu1 %890 }
 0x5a6   :  { %v920_v42 = vsub.f32 %v872_v52, %v891_v36 }
 0x5a8   :  { %v1549_v63 = vpop.eup %1548  ;;  %v938_v44 = vmul.f32 1.442695, %v920_v42 }
 0x5a9   :  { %1019 = vadd.xlane.f32.xlu0 %v1549_v63  ;;  %v970_v45 = vmul.f32 %v1549_v63, %v1903_v9 }
 0x5aa   :  { %1550 = vpow2.f32 %v938_v44 }
 0x5ad   :  { %v895_v11 = vpop.xlane.xlu1 %894 }
 0x5ae   :  { %v922_v3 = vsub.f32 %v874_v6, %v895_v11  ;;  %v907_v6 = vpop.xlane.xlu2 %906 }
 0x5af   :  { %v928_v54 = vsub.f32 %v1868_v7, %v907_v6  ;;  %v929_v7 = vsub.f32 %v1872_v0, %v909_v37 }
 0x5b0   :  { %v1551_v13 = vpop.eup %1550  ;;  %v942_v47 = vmul.f32 1.442695, %v922_v3  ;;  %v1468_v3 = vld [vmem:[%s2079_s4 + $0x30] sm:$0xff] }
 0x5b1   :  { %987 = vadd.xlane.f32.xlu0 %v970_v45  ;;  %1021 = vadd.xlane.f32.xlu1 %v1551_v13  ;;  %v971_v50 = vmul.f32 %v1551_v13, %v1903_v9  ;;  %v954_v20 = vmul.f32 1.442695, %v928_v54  ;;  %v956_v24 = vmul.f32 1.442695, %v929_v7  ;;  %v1467_v45 = vld [vmem:[%s2079_s4 + $0x28] sm:$0xff] }
 0x5b2   :  { %1552 = vpow2.f32 %v942_v47 }
 0x5b5   :  { %v897_v48 = vpop.xlane.xlu1 %896 }
 0x5b6   :  { %v923_v49 = vsub.f32 %v1883_v12, %v897_v48 }
 0x5b8   :  { %v944_v51 = vmul.f32 1.442695, %v923_v49  ;;  %v1553_v53 = vpop.eup %1552 }
 0x5b9   :  { %1023 = vadd.xlane.f32.xlu0 %v1547_v27  ;;  %989 = vadd.xlane.f32.xlu1 %v971_v50  ;;  %v973_v55 = vmul.f32 %v1553_v53, %v1903_v9  ;;  %v913_v27 = vpop.xlane.xlu0 %912 }
 0x5ba   :  { %1554 = vpow2.f32 %v944_v51  ;;  %v931_v30 = vsub.f32 %v1878_v5, %v913_v27  ;;  %v1462_v5 = vld [vmem:[%s2078_s3 + $0x20] sm:$0xff] }
 0x5bc   :  { %v960_v32 = vmul.f32 1.442695, %v931_v30 }
 0x5bd   :  { %v899_v46 = vpop.xlane.xlu1 %898 }
 0x5be   :  { %v924_v2 = vsub.f32 %v1887_v14, %v899_v46 }
 0x5c0   :  { %v946_v56 = vmul.f32 1.442695, %v924_v2  ;;  %v1555_v57 = vpop.eup %1554 }
 0x5c1   :  { %993 = vadd.xlane.f32.xlu0 %v973_v55  ;;  %1025 = vadd.xlane.f32.xlu1 %v1553_v53  ;;  %v974_v4 = vmul.f32 %v1555_v57, %v1903_v9 }
 0x5c2   :  { %1556 = vpow2.f32 %v946_v56 }
 0x5c5   :  { %v901_v58 = vpop.xlane.xlu1 %900 }
 0x5c6   :  { %v925_v60 = vsub.f32 %v1891_v16, %v901_v58 }
 0x5c8   :  { %v1557_v61 = vpop.eup %1556  ;;  %v948_v1 = vmul.f32 1.442695, %v925_v60 }
 0x5c9   :  { %1027 = vadd.xlane.f32.xlu0 %v1555_v57  ;;  %v975_v17 = vmul.f32 %v1557_v61, %v1903_v9  ;;  %995 = vadd.xlane.f32.xlu1 %v974_v4 }
 0x5ca   :  { %1558 = vpow2.f32 %v948_v1 }
 0x5cb   :  { %997 = vadd.xlane.f32.xlu2 %v975_v17 }
 0x5cd   :  { %v903_v52 = vpop.xlane.xlu1 %902 }
 0x5ce   :  { %v926_v8 = vsub.f32 %v1895_v18, %v903_v52 }
 0x5d0   :  { %v1559_v12 = vpop.eup %1558  ;;  %v950_v14 = vmul.f32 1.442695, %v926_v8 }
 0x5d1   :  { %v976_v16 = vmul.f32 %v1559_v12, %v1903_v9  ;;  %1029 = vadd.xlane.f32.xlu1 %v1557_v61 }
 0x5d2   :  { %1560 = vpow2.f32 %v950_v14 }
 0x5d3   :  { %1031 = vadd.xlane.f32.xlu2 %v1559_v12  ;;  %999 = vadd.xlane.f32.xlu0 %v976_v16  ;;  %1562 = vpow2.f32 %v954_v20  ;;  %v1466_v12 = vld [vmem:[%s2079_s4 + $0x20] sm:$0xff]  ;;  %s1459_s4 = sld [smem:[#allocation3 + $0x86]] }
 0x5d5   :  { %v905_v21 = vpop.xlane.xlu1 %904 }
 0x5d6   :  { %v927_v31 = vsub.f32 %v1900_v39, %v905_v21 }
 0x5d8   :  { %v1561_v35 = vpop.eup %1560  ;;  %v952_v34 = vmul.f32 1.442695, %v927_v31 }
 0x5d9   :  { %v977_v18 = vmul.f32 %v1561_v35, %v1903_v9  ;;  %v1563_v26 = vpop.eup %1562 }
 0x5da   :  { %1564 = vpow2.f32 %v952_v34  ;;  %v979_v28 = vmul.f32 %v1563_v26, %v1903_v9 }
 0x5db   :  { %1033 = vadd.xlane.f32.xlu0 %v1561_v35  ;;  %1001 = vadd.xlane.f32.xlu1 %v977_v18  ;;  %v986_v14 = vpop.xlane.xlu2 %985 }
 0x5dd   :  { %v911_v38 = vpop.xlane.xlu1 %910 }
 0x5de   :  { %v930_v43 = vsub.f32 %v1907_v25, %v911_v38 }
 0x5e0   :  { %v1565_v22 = vpop.eup %1564  ;;  %v958_v23 = vmul.f32 1.442695, %v930_v43 }
 0x5e1   :  { %v978_v39 = vmul.f32 %v1565_v22, %v1903_v9 }
 0x5e2   :  { %1566 = vpow2.f32 %v958_v23 }
 0x5e3   :  { %1035 = vadd.xlane.f32.xlu1 %v1565_v22  ;;  %1003 = vadd.xlane.f32.xlu2 %v978_v39  ;;  %1568 = vpow2.f32 %v956_v24  ;;  %v992_v39 = vpop.xlane.xlu2 %991 }
 0x5e4   :  { %1005 = vadd.xlane.f32.xlu0 %v979_v28  ;;  %1570 = vpow2.f32 %v960_v32 }
 0x5e5   :  { %v915_v13 = vpop.xlane.xlu1 %914 }
 0x5e6   :  { %v932_v47 = vsub.f32 %v1912_v59, %v915_v13 }
 0x5e8   :  { %v917_v19 = vpop.xlane.xlu0 %916  ;;  %v1567_v29 = vpop.eup %1566  ;;  %v962_v48 = vmul.f32 1.442695, %v932_v47 }
 0x5e9   :  { %v1569_v0 = vpop.eup %1568  ;;  %v933_v25 = vsub.f32 %v1916_v15, %v917_v19  ;;  %v981_v42 = vmul.f32 %v1567_v29, %v1903_v9 }
 0x5ea   :  { %v980_v63 = vmul.f32 %v1569_v0, %v1903_v9  ;;  %v1571_v44 = vpop.eup %1570 }
 0x5eb   :  { %1041 = vadd.xlane.f32.xlu1 %v1567_v29  ;;  %1037 = vadd.xlane.f32.xlu2 %v1563_v26  ;;  %v964_v36 = vmul.f32 1.442695, %v933_v25  ;;  %v982_v49 = vmul.f32 %v1571_v44, %v1903_v9 }
 0x5ec   :  { %1039 = vadd.xlane.f32.xlu0 %v1569_v0 }
 0x5ed   :  { %1572 = vpow2.f32 %v964_v36  ;;  %v1018_v51 = vpop.xlane.xlu1 %1017 }
 0x5ee   :  { %1574 = vpow2.f32 %v962_v48  ;;  %v1060_v6 = vand.u32 2147483648, %v1018_v51  ;;  %vm1054_vm2 = vweird.f32 %v1018_v51  ;;  %v1058_v8 = vand.u32 2147483647, %v1018_v51 }
 0x5ef   :  { %1576 = vrcp.f32 %v1018_v51 }
 0x5f0   :  { %v1061_v31 = vor.u32 1.1754944e-38, %v1060_v6  ;;  %vm1059_vm4 = vcmp.eq.f32.partialorder %v1058_v8, 8.507059e+37 }
 0x5f3   :  { %1009 = vadd.xlane.f32.xlu1 %v981_v42  ;;  %1007 = vadd.xlane.f32.xlu2 %v980_v63  ;;  %v1573_v11 = vpop.eup %1572 }
 0x5f4   :  { %v984_v15 = vmul.f32 %v1573_v11, %v1903_v9  ;;  %v1575_v50 = vpop.eup %1574 }
 0x5f5   :  { %v983_v46 = vmul.f32 %v1575_v50, %v1903_v9  ;;  %v1577_v55 = vpop.eup %1576 }
 0x5f6   :  { %v1050_v57 = vmul.f32 %v1577_v55, %v1018_v51  ;;  %vm1055_vm1 = vweird.f32 %v1577_v55 }
 0x5f7   :  { %vm1056_vm3 = vmor %vm1054_vm2, %vm1055_vm1 }
 0x5f8   :  { %v1051_v59 = vsub.f32 1.0, %v1050_v57 }
 0x5fa   :  { %v1052_v61 = vmul.f32 %v1577_v55, %v1051_v59 }
 0x5fb   :  { %1047 = vadd.xlane.f32.xlu1 %v1573_v11  ;;  %1043 = vadd.xlane.f32.xlu2 %v1571_v44 }
 0x5fc   :  { %v1053_v17 = vadd.f32 %v1577_v55, %v1052_v61 }
 0x5fe   :  { %v1057_v21 = vsel %vm1056_vm3, %v1577_v55, %v1053_v17 }
 0x5ff   :  { %v1062_v34 = vsel %vm1059_vm4, %v1061_v31, %v1057_v21 }
 0x600   :  { %1328 = vperm.xlu0 %1477, %v1462_v5   ;;  %v1063_v26 = vmul.f32 %v1062_v34, %v986_v14 }
 0x603   :  { %1015 = vadd.xlane.f32.xlu1 %v984_v15 }
 0x613   :  { %1365 = vperm.xlu2 %1478, %v1468_v3  }
 0x61c   :  { %1360 = vperm.xlu1 %1479, %v1467_v45   ;;  %v1020_v53 = vpop.xlane.xlu0 %1019 }
 0x61d   :  { %1578 = vrcp.f32 %v1020_v53  ;;  %v1075_v38 = vand.u32 2147483648, %v1020_v53  ;;  %vm1069_vm6 = vweird.f32 %v1020_v53  ;;  %v1073_v43 = vand.u32 2147483647, %v1020_v53 }
 0x61f   :  { %v1076_v27 = vor.u32 1.1754944e-38, %v1075_v38  ;;  %vm1074_vm8 = vcmp.eq.f32.partialorder %v1073_v43, 8.507059e+37 }
 0x623   :  { %v1579_v58 = vpop.eup %1578 }
 0x624   :  { %v1953_v2 = vpop.xlane.xlu1 %1021  ;;  %v988_v56 = vpop.xlane.xlu0 %987  ;;  %v1065_v1 = vmul.f32 %v1579_v58, %v1020_v53  ;;  %vm1070_vm5 = vweird.f32 %v1579_v58 }
 0x625   :  { %1580 = vrcp.f32 %v1953_v2  ;;  %vm1071_vm7 = vmor %vm1069_vm6, %vm1070_vm5  ;;  %v1090_v32 = vand.u32 2147483648, %v1953_v2  ;;  %vm1084_vm10 = vweird.f32 %v1953_v2  ;;  %v1088_v42 = vand.u32 2147483647, %v1953_v2 }
 0x626   :  { %v1066_v9 = vsub.f32 1.0, %v1065_v1 }
 0x627   :  { %v1091_v5 = vor.u32 1.1754944e-38, %v1090_v32  ;;  %vm1089_vm12 = vcmp.eq.f32.partialorder %v1088_v42, 8.507059e+37 }
 0x628   :  { %v1067_v54 = vmul.f32 %v1579_v58, %v1066_v9 }
 0x62a   :  { %1011 = vadd.xlane.f32.xlu0 %v982_v49  ;;  %v1068_v37 = vadd.f32 %v1579_v58, %v1067_v54 }
 0x62b   :  { %v1581_v52 = vpop.eup %1580 }
 0x62c   :  { %v1955_v60 = vpop.xlane.xlu1 %989  ;;  %v1958_v4 = vpop.xlane.xlu0 %1023  ;;  %v1080_v16 = vmul.f32 %v1581_v52, %v1953_v2  ;;  %v1072_v22 = vsel %vm1071_vm7, %v1579_v58, %v1068_v37  ;;  %vm1085_vm9 = vweird.f32 %v1581_v52 }
 0x62d   :  { %1582 = vrcp.f32 %v1958_v4  ;;  %v1077_v19 = vsel %vm1074_vm8, %v1076_v27, %v1072_v22  ;;  %vm1086_vm11 = vmor %vm1084_vm10, %vm1085_vm9  ;;  %v1105_v49 = vand.u32 2147483648, %v1958_v4  ;;  %vm1099_vm14 = vweird.f32 %v1958_v4 }
 0x62e   :  { %v1081_v18 = vsub.f32 1.0, %v1080_v16  ;;  %v1078_v36 = vmul.f32 %v1077_v19, %v988_v56 }
 0x62f   :  { %v1106_v55 = vor.u32 1.1754944e-38, %v1105_v49 }
 0x630   :  { %v1082_v24 = vmul.f32 %v1581_v52, %v1081_v18 }
 0x632   :  { %1045 = vadd.xlane.f32.xlu0 %v1575_v50  ;;  %v1083_v0 = vadd.f32 %v1581_v52, %v1082_v24  ;;  %v1103_v50 = vand.u32 2147483647, %v1958_v4 }
 0x633   :  { %v1583_v7 = vpop.eup %1582 }
 0x634   :  { %v1965_v20 = vpop.xlane.xlu1 %1025  ;;  %v1967_v35 = vpop.xlane.xlu0 %993  ;;  %v1095_v23 = vmul.f32 %v1583_v7, %v1958_v4  ;;  %v1087_v44 = vsel %vm1086_vm11, %v1581_v52, %v1083_v0  ;;  %vm1100_vm13 = vweird.f32 %v1583_v7  ;;  %vm1104_vm1 = vcmp.eq.f32.partialorder %v1103_v50, 8.507059e+37 }
 0x635   :  { %1584 = vrcp.f32 %v1965_v20  ;;  %v1092_v3 = vsel %vm1089_vm12, %v1091_v5, %v1087_v44  ;;  %vm1101_vm15 = vmor %vm1099_vm14, %vm1100_vm13  ;;  %vm1114_vm3 = vweird.f32 %v1965_v20  ;;  %v1118_v4 = vand.u32 2147483647, %v1965_v20 }
 0x636   :  { %v1096_v29 = vsub.f32 1.0, %v1095_v23  ;;  %v1093_v51 = vmul.f32 %v1092_v3, %v1955_v60  ;;  %v1120_v60 = vand.u32 2147483648, %v1965_v20 }
 0x637   :  { %vm1119_vm5 = vcmp.eq.f32.partialorder %v1118_v4, 8.507059e+37 }
 0x638   :  { %v1097_v63 = vmul.f32 %v1583_v7, %v1096_v29  ;;  %v1121_v8 = vor.u32 1.1754944e-38, %v1120_v60 }
 0x63a   :  { %v1098_v45 = vadd.f32 %v1583_v7, %v1097_v63 }
 0x63b   :  { %v1585_v25 = vpop.eup %1584 }
 0x63c   :  { %1013 = vadd.xlane.f32.xlu2 %v983_v46  ;;  %v1971_v28 = vpop.xlane.xlu1 %995  ;;  %v1973_v30 = vpop.xlane.xlu0 %1027  ;;  %v1110_v11 = vmul.f32 %v1585_v25, %v1965_v20  ;;  %v1102_v53 = vsel %vm1101_vm15, %v1583_v7, %v1098_v45  ;;  %vm1115_vm2 = vweird.f32 %v1585_v25 }
 0x63d   :  { %1586 = vrcp.f32 %v1973_v30  ;;  %v1107_v57 = vsel %vm1104_vm1, %v1106_v55, %v1102_v53  ;;  %vm1116_vm4 = vmor %vm1114_vm3, %vm1115_vm2  ;;  %v1135_v31 = vand.u32 2147483648, %v1973_v30  ;;  %vm1129_vm7 = vweird.f32 %v1973_v30 }
 0x63e   :  { %v1980_v15 = vpop.xlane.xlu2 %997  ;;  %v1111_v13 = vsub.f32 1.0, %v1110_v11  ;;  %v1108_v17 = vmul.f32 %v1107_v57, %v992_v39  ;;  %v1133_v34 = vand.u32 2147483647, %v1973_v30 }
 0x63f   :  { %v1136_v43 = vor.u32 1.1754944e-38, %v1135_v31 }
 0x640   :  { %v1112_v46 = vmul.f32 %v1585_v25, %v1111_v13  ;;  %vm1134_vm9 = vcmp.eq.f32.partialorder %v1133_v34, 8.507059e+37 }
 0x642   :  { %v1113_v59 = vadd.f32 %v1585_v25, %v1112_v46 }
 0x643   :  { %v1587_v48 = vpop.eup %1586 }
 0x644   :  { %v1982_v47 = vpop.xlane.xlu1 %1029  ;;  %v1125_v2 = vmul.f32 %v1587_v48, %v1973_v30  ;;  %v1117_v9 = vsel %vm1116_vm4, %v1585_v25, %v1113_v59  ;;  %vm1130_vm6 = vweird.f32 %v1587_v48 }
 0x645   :  { %1588 = vrcp.f32 %v1982_v47  ;;  %v1122_v14 = vsel %vm1119_vm5, %v1121_v8, %v1117_v9  ;;  %vm1131_vm8 = vmor %vm1129_vm7, %vm1130_vm6  ;;  %vm1144_vm11 = vweird.f32 %v1982_v47  ;;  %v1148_v29 = vand.u32 2147483647, %v1982_v47 }
 0x646   :  { %v1990_v56 = vpop.xlane.xlu0 %999  ;;  %v1126_v58 = vsub.f32 1.0, %v1125_v2  ;;  %v1992_v61 = vpop.xlane.xlu2 %1031  ;;  %v1123_v37 = vmul.f32 %v1122_v14, %v1967_v35  ;;  %v1150_v35 = vand.u32 2147483648, %v1982_v47 }
 0x647   :  { %1590 = vrcp.f32 %v1992_v61  ;;  %vm1149_vm13 = vcmp.eq.f32.partialorder %v1148_v29, 8.507059e+37  ;;  %v1165_v5 = vand.u32 2147483648, %v1992_v61  ;;  %vm1159_vm15 = vweird.f32 %v1992_v61 }
 0x648   :  { %v1127_v52 = vmul.f32 %v1587_v48, %v1126_v58  ;;  %v1163_v3 = vand.u32 2147483647, %v1992_v61 }
 0x649   :  { %v1166_v49 = vor.u32 1.1754944e-38, %v1165_v5 }
 0x64a   :  { %v1128_v54 = vadd.f32 %v1587_v48, %v1127_v52  ;;  %vm1164_vm2 = vcmp.eq.f32.partialorder %v1163_v3, 8.507059e+37 }
 0x64b   :  { %v1589_v1 = vpop.eup %1588 }
 0x64c   :  { %v1140_v6 = vmul.f32 %v1589_v1, %v1982_v47  ;;  %v1132_v18 = vsel %vm1131_vm8, %v1587_v48, %v1128_v54  ;;  %vm1145_vm10 = vweird.f32 %v1589_v1 }
 0x64d   :  { %v1591_v20 = vpop.eup %1590  ;;  %v1137_v22 = vsel %vm1134_vm9, %v1136_v43, %v1132_v18  ;;  %vm1146_vm12 = vmor %vm1144_vm11, %vm1145_vm10 }
 0x64e   :  { %v1141_v16 = vsub.f32 1.0, %v1140_v6  ;;  %v2001_v21 = vpop.xlane.xlu0 %1033  ;;  %v1155_v38 = vmul.f32 %v1591_v20, %v1992_v61  ;;  %v1138_v19 = vmul.f32 %v1137_v22, %v1971_v28  ;;  %vm1160_vm14 = vweird.f32 %v1591_v20 }
 0x64f   :  { %1592 = vrcp.f32 %v2001_v21  ;;  %vm1161_vm1 = vmor %vm1159_vm15, %vm1160_vm14  ;;  %v1180_v55 = vand.u32 2147483648, %v2001_v21  ;;  %vm1174_vm4 = vweird.f32 %v2001_v21 }
 0x650   :  { %v1142_v7 = vmul.f32 %v1589_v1, %v1141_v16  ;;  %v1156_v24 = vsub.f32 1.0, %v1155_v38 }
 0x652   :  { %v1143_v23 = vadd.f32 %v1589_v1, %v1142_v7  ;;  %v1157_v30 = vmul.f32 %v1591_v20, %v1156_v24 }
 0x654   :  { %1355 = vperm.xlu2 %1478, %v1466_v12   ;;  %v1999_v12 = vpop.xlane.xlu1 %1001  ;;  %v1147_v0 = vsel %vm1146_vm12, %v1589_v1, %v1143_v23  ;;  %v1158_v63 = vadd.f32 %v1591_v20, %v1157_v30  ;;  %v1181_v1 = vor.u32 1.1754944e-38, %v1180_v55 }
 0x655   :  { %v1593_v39 = vpop.eup %1592 }
 0x656   :  { %v1170_v25 = vmul.f32 %v1593_v39, %v2001_v21  ;;  %v1162_v13 = vsel %vm1161_vm1, %v1591_v20, %v1158_v63  ;;  %vm1175_vm3 = vweird.f32 %v1593_v39 }
 0x657   :  { %v2019_v32 = vpop.xlane.xlu0 %1005  ;;  %vm1176_vm5 = vmor %vm1174_vm4, %vm1175_vm3 }
 0x658   :  { %v1171_v28 = vsub.f32 1.0, %v1170_v25 }
 0x65a   :  { %v1172_v47 = vmul.f32 %v1593_v39, %v1171_v28 }
 0x65b   :  { %1289 = vxpose.xlu0.b32.start [1/16] (narrow) %v1063_v26, 8  ;;  %v2009_v26 = vpop.xlane.xlu2 %1003 }
 0x65c   :  { %v2011_v27 = vpop.xlane.xlu1 %1035  ;;  %v1173_v53 = vadd.f32 %v1593_v39, %v1172_v47 }
 0x65d   :  { %1594 = vrcp.f32 %v2011_v27  ;;  %v1195_v8 = vand.u32 2147483648, %v2011_v27  ;;  %vm1189_vm8 = vweird.f32 %v2011_v27  ;;  %v1193_v54 = vand.u32 2147483647, %v2011_v27 }
 0x65e   :  { %v1177_v59 = vsel %vm1176_vm5, %v1593_v39, %v1173_v53 }
 0x65f   :  { %v2029_v50 = vpop.xlane.xlu0 %1039  ;;  %v1196_v31 = vor.u32 1.1754944e-38, %v1195_v8  ;;  %vm1194_vm10 = vcmp.eq.f32.partialorder %v1193_v54, 8.507059e+37 }
 0x660   :  { %v1225_v25 = vand.u32 2147483648, %v2029_v50  ;;  %vm1219_vm1 = vweird.f32 %v2029_v50 }
 0x663   :  { %1290 = vxpose.xlu0.b32.cont [2/16] (narrow) %v1078_v36, 8  ;;  %v1151_v36 = vor.u32 1.1754944e-38, %v1150_v35  ;;  %v2021_v44 = vpop.xlane.xlu2 %1037  ;;  %v1595_v11 = vpop.eup %1594 }
 0x664   :  { %1596 = vrcp.f32 %v2021_v44  ;;  %v1185_v48 = vmul.f32 %v1595_v11, %v2011_v27  ;;  %vm1190_vm7 = vweird.f32 %v1595_v11  ;;  %v2039_v9 = vpop.xlane.xlu1 %1041  ;;  %v1210_v38 = vand.u32 2147483648, %v2021_v44 }
 0x665   :  { %v1152_v42 = vsel %vm1149_vm13, %v1151_v36, %v1147_v0  ;;  %1598 = vrcp.f32 %v2029_v50  ;;  %vm1191_vm9 = vmor %vm1189_vm8, %vm1190_vm7  ;;  %vm1204_vm12 = vweird.f32 %v2021_v44  ;;  %v1208_v22 = vand.u32 2147483647, %v2021_v44 }
 0x666   :  { %v1153_v45 = vmul.f32 %v1152_v42, %v1980_v15  ;;  %v1186_v46 = vsub.f32 1.0, %v1185_v48  ;;  %v1178_v15 = vand.u32 2147483647, %v2001_v21  ;;  %1600 = vrcp.f32 %v2039_v9 }
 0x667   :  { %v1211_v35 = vor.u32 1.1754944e-38, %v1210_v38  ;;  %vm1209_vm14 = vcmp.eq.f32.partialorder %v1208_v22, 8.507059e+37  ;;  %v1223_v36 = vand.u32 2147483647, %v2029_v50  ;;  %v1240_v48 = vand.u32 2147483648, %v2039_v9 }
 0x668   :  { %v1187_v58 = vmul.f32 %v1595_v11, %v1186_v46  ;;  %vm1179_vm6 = vcmp.eq.f32.partialorder %v1178_v15, 8.507059e+37  ;;  %vm1234_vm5 = vweird.f32 %v2039_v9 }
 0x669   :  { %v1182_v4 = vsel %vm1179_vm6, %v1181_v1, %v1177_v59  ;;  %vm1224_vm3 = vcmp.eq.f32.partialorder %v1223_v36, 8.507059e+37  ;;  %v1241_v46 = vor.u32 1.1754944e-38, %v1240_v48 }
 0x66a   :  { %v1597_v2 = vpop.eup %1596  ;;  %v1183_v14 = vmul.f32 %v1182_v4, %v1999_v12 }
 0x66b   :  { %1291 = vxpose.xlu0.b32.cont [3/16] (narrow) %v1093_v51, 8  ;;  %v1167_v51 = vsel %vm1164_vm2, %v1166_v49, %v1162_v13  ;;  %v1200_v61 = vmul.f32 %v1597_v2, %v2021_v44  ;;  %v1008_v6 = vpop.xlane.xlu2 %1007  ;;  %vm1205_vm11 = vweird.f32 %v1597_v2 }
 0x66c   :  { %v1168_v57 = vmul.f32 %v1167_v51, %v1990_v56  ;;  %v1599_v56 = vpop.eup %1598  ;;  %vm1206_vm13 = vmor %vm1204_vm12, %vm1205_vm11 }
 0x66d   :  { %v1201_v52 = vsub.f32 1.0, %v1200_v61  ;;  %v1215_v21 = vmul.f32 %v1599_v56, %v2029_v50  ;;  %v1601_v12 = vpop.eup %1600  ;;  %vm1220_vm15 = vweird.f32 %v1599_v56 }
 0x66e   :  { %v1230_v24 = vmul.f32 %v1601_v12, %v2039_v9  ;;  %vm1221_vm2 = vmor %vm1219_vm1, %vm1220_vm15  ;;  %vm1235_vm4 = vweird.f32 %v1601_v12 }
 0x66f   :  { %v1202_v20 = vmul.f32 %v1597_v2, %v1201_v52  ;;  %v1216_v18 = vsub.f32 1.0, %v1215_v21  ;;  %vm1236_vm6 = vmor %vm1234_vm5, %vm1235_vm4 }
 0x670   :  { %v1231_v0 = vsub.f32 1.0, %v1230_v24 }
 0x671   :  { %v1203_v7 = vadd.f32 %v1597_v2, %v1202_v20  ;;  %v1217_v39 = vmul.f32 %v1599_v56, %v1216_v18 }
 0x672   :  { %v2037_v60 = vpop.permute.xlu0 %1328  ;;  %v1232_v28 = vmul.f32 %v1601_v12, %v1231_v0 }
 0x673   :  { %1292 = vxpose.xlu0.b32.cont [4/16] (narrow) %v1108_v17, 8  ;;  %v1188_v17 = vadd.f32 %v1595_v11, %v1187_v58  ;;  %v1044_v23 = vpop.xlane.xlu2 %1043  ;;  %v1207_v27 = vsel %vm1206_vm13, %v1597_v2, %v1203_v7  ;;  %v1218_v30 = vadd.f32 %v1599_v56, %v1217_v39 }
 0x674   :  { %1602 = vrcp.f32 %v1044_v23  ;;  %v1212_v29 = vsel %vm1209_vm14, %v1211_v35, %v1207_v27  ;;  %v1255_v61 = vand.u32 2147483648, %v1044_v23  ;;  %v1253_v4 = vand.u32 2147483647, %v1044_v23 }
 0x675   :  { %v1192_v16 = vsel %vm1191_vm9, %v1595_v11, %v1188_v17  ;;  %v1213_v42 = vmul.f32 %v1212_v29, %v2019_v32  ;;  %v1222_v44 = vsel %vm1221_vm2, %v1599_v56, %v1218_v30  ;;  %v1226_v11 = vor.u32 1.1754944e-38, %v1225_v25 }
 0x676   :  { %v1238_v32 = vand.u32 2147483647, %v2039_v9  ;;  %vm1249_vm9 = vweird.f32 %v1044_v23  ;;  %v1256_v52 = vor.u32 1.1754944e-38, %v1255_v61  ;;  %vm1254_vm11 = vcmp.eq.f32.partialorder %v1253_v4, 8.507059e+37 }
 0x677   :  { %v1227_v3 = vsel %vm1224_vm3, %v1226_v11, %v1222_v44  ;;  %v1321_v35 = vstv %s1459_s4 }
 0x678   :  { %v1228_v49 = vmul.f32 %v1227_v3, %v1008_v6  ;;  %vm1239_vm7 = vcmp.eq.f32.partialorder %v1238_v32, 8.507059e+37 }
 0x67a   :  { %v1603_v63 = vpop.eup %1602 }
 0x67b   :  { %1293 = vxpose.xlu0.b32.cont [5/16] (narrow) %v1123_v37, 8  ;;  %v1197_v37 = vsel %vm1194_vm10, %v1196_v31, %v1192_v16  ;;  %v1245_v5 = vmul.f32 %v1603_v63, %v1044_v23  ;;  %vm1250_vm8 = vweird.f32 %v1603_v63  ;;  %v1366_v8 = vpop.permute.xlu2 %1365 }
 0x67c   :  { %v1198_v43 = vmul.f32 %v1197_v37, %v2009_v26  ;;  %vm1251_vm10 = vmor %vm1249_vm9, %vm1250_vm8 }
 0x67d   :  { %v1246_v50 = vsub.f32 1.0, %v1245_v5 }
 0x67f   :  { %v1247_v2 = vmul.f32 %v1603_v63, %v1246_v50 }
 0x681   :  { %v1248_v58 = vadd.f32 %v1603_v63, %v1247_v2 }
 0x683   :  { %1294 = vxpose.xlu0.b32.cont [6/16] (narrow) %v1138_v19, 8  ;;  %v1010_v19 = vpop.xlane.xlu1 %1009  ;;  %v1252_v9 = vsel %vm1251_vm10, %v1603_v63, %v1248_v58 }
 0x68b   :  { %1295 = vxpose.xlu0.b32.cont [7/16] (narrow) %v1153_v45, 8  ;;  %v1233_v45 = vadd.f32 %v1601_v12, %v1232_v28  ;;  %v1048_v13 = vpop.xlane.xlu1 %1047 }
 0x68c   :  { %vm1279_vm2 = vweird.f32 %v1048_v13 }
 0x68d   :  { %v1237_v51 = vsel %vm1236_vm6, %v1601_v12, %v1233_v45  ;;  %v1285_v12 = vand.u32 2147483648, %v1048_v13 }
 0x68e   :  { %v1242_v55 = vsel %vm1239_vm7, %v1241_v46, %v1237_v51 }
 0x68f   :  { %v1243_v59 = vmul.f32 %v1242_v55, %v1010_v19  ;;  %v1323_v19 = vstv %s1460_s23 }
 0x693   :  { %1296 = vxpose.xlu0.b32.cont [8/16] (narrow) %v1168_v57, 8  ;;  %v1016_v27 = vpop.xlane.xlu1 %1015 }
 0x69b   :  { %1297 = vxpose.xlu0.b32.cont [9/16] (narrow) %v1183_v14, 8  ;;  %v1257_v14 = vsel %vm1254_vm11, %v1256_v52, %v1252_v9  ;;  %v1361_v5 = vpop.permute.xlu1 %1360 }
 0x69d   :  { %v2047_v34 = vpop.xlane.xlu0 %1011 }
 0x69e   :  { %v1258_v16 = vmul.f32 %v1257_v14, %v2047_v34  ;;  %v1286_v34 = vor.u32 1.1754944e-38, %v1285_v12 }
 0x6a3   :  { %1298 = vxpose.xlu0.b32.cont [10/16] (narrow) %v1198_v43, 8  ;;  %v1283_v43 = vand.u32 2147483647, %v1048_v13 }
 0x6a5   :  { %v1046_v26 = vpop.xlane.xlu0 %1045  ;;  %vm1284_vm4 = vcmp.eq.f32.partialorder %v1283_v43, 8.507059e+37 }
 0x6a6   :  { %1604 = vrcp.f32 %v1046_v26  ;;  %v1270_v54 = vand.u32 2147483648, %v1046_v26  ;;  %vm1264_vm13 = vweird.f32 %v1046_v26  ;;  %v1268_v21 = vand.u32 2147483647, %v1046_v26 }
 0x6a7   :  { %1606 = vrcp.f32 %v1048_v13 }
 0x6a8   :  { %v1271_v37 = vor.u32 1.1754944e-38, %v1270_v54  ;;  %vm1269_vm15 = vcmp.eq.f32.partialorder %v1268_v21, 8.507059e+37 }
 0x6ab   :  { %1299 = vxpose.xlu0.b32.cont [11/16] (narrow) %v1213_v42, 8 }
 0x6ac   :  { %v1605_v47 = vpop.eup %1604 }
 0x6ad   :  { %v1260_v53 = vmul.f32 %v1605_v47, %v1046_v26  ;;  %v1607_v57 = vpop.eup %1606  ;;  %vm1265_vm12 = vweird.f32 %v1605_v47 }
 0x6ae   :  { %v1275_v1 = vmul.f32 %v1607_v57, %v1048_v13  ;;  %vm1266_vm14 = vmor %vm1264_vm13, %vm1265_vm12  ;;  %vm1280_vm1 = vweird.f32 %v1607_v57 }
 0x6af   :  { %v1261_v15 = vsub.f32 1.0, %v1260_v53  ;;  %v1014_v38 = vpop.xlane.xlu2 %1013  ;;  %vm1281_vm3 = vmor %vm1279_vm2, %vm1280_vm1 }
 0x6b0   :  { %v1276_v6 = vsub.f32 1.0, %v1275_v1 }
 0x6b1   :  { %v1262_v17 = vmul.f32 %v1605_v47, %v1261_v15 }
 0x6b2   :  { %v1277_v20 = vmul.f32 %v1607_v57, %v1276_v6 }
 0x6b3   :  { %1300 = vxpose.xlu0.b32.cont [12/16] (narrow) %v1228_v49, 8  ;;  %v1263_v56 = vadd.f32 %v1605_v47, %v1262_v17 }
 0x6b4   :  { %v1278_v7 = vadd.f32 %v1607_v57, %v1277_v20 }
 0x6b5   :  { %v1267_v31 = vsel %vm1266_vm14, %v1605_v47, %v1263_v56 }
 0x6b6   :  { %v1272_v18 = vsel %vm1269_vm15, %v1271_v37, %v1267_v31  ;;  %v1282_v23 = vsel %vm1281_vm3, %v1607_v57, %v1278_v7 }
 0x6b7   :  { %v1273_v22 = vmul.f32 %v1272_v18, %v1014_v38  ;;  %v1287_v24 = vsel %vm1284_vm4, %v1286_v34, %v1282_v23  ;;  %v1356_v13 = vpop.permute.xlu2 %1355 }
 0x6b8   :  { %v1288_v39 = vmul.f32 %v1287_v24, %v1016_v27 }
 0x6bb   :  { %1301 = vxpose.xlu0.b32.cont [13/16] (narrow) %v1243_v59, 8 }
 0x6c3   :  { %1302 = vxpose.xlu0.b32.cont [14/16] (narrow) %v1258_v16, 8 }
 0x6cb   :  { %1303 = vxpose.xlu0.b32.cont [15/16] (narrow) %v1273_v22, 8 }
 0x6d3   :  { %1304 = vxpose.xlu0.b32.end [16/16] (narrow) %v1288_v39, 8 }
 0x6ff   :  { %v1305_v29 = vpop.trf.xlu0 }
 0x700   :  { %v1322_v0 = vmul.f32 %v1321_v35, %v1305_v29 }
 0x702   :  { %v1324_v30 = vadd.f32 %v1323_v19, %v1322_v0 }
 0x704   :  { %v1325_v26 = vadd.f32 %v1324_v30, %v1859_v40 }
 0x706   :  { %v1347_v25 = vperm.slane %v1325_v26, 0 }
 0x708   :  { %v1352_v36 = vmul.f32 %v1347_v25, %v1820_v10  ;;  %v1351_v42 = vmul.f32 %v1347_v25, %v1750_v41  ;;  %v1350_v63 = vmul.f32 %v1347_v25, %v1826_v33  ;;  %v1349_v11 = vmul.f32 %v1347_v25, %v2037_v60  ;;  %v1470_v41 = vld [vmem:[%s2080_s5 + $0x1] sm:$0x1]  ;;  %s1655_s5 = smov [#allocation6]  }
 0x709   :  { %v1405_v33 = vstv %s1461_s26  ;;  %s1432_s27 = sshll.u32 %s1655_s5, 4  ;;  %s1433_s27 = int_to_ptr.vmem [resolvable:$true] %s1432_s27 }
 0x70a   :  { %v1376_v28 = vadd.f32 %v1764_v62, %v1352_v36  ;;  %v1375_v44 = vadd.f32 %v1366_v8, %v1351_v42  ;;  %v1374_v45 = vadd.f32 %v1361_v5, %v1350_v63  ;;  %v1373_v48 = vadd.f32 %v1356_v13, %v1349_v11 }
 0x70c   :  { %v1380_v3 = vmax.f32 %v1376_v28, 0.0  ;;  %v1379_v47 = vmax.f32 %v1375_v44, 0.0  ;;  %v1378_v40 = vmax.f32 %v1374_v45, 0.0  ;;  %v1377_v10 = vmax.f32 %v1373_v48, 0.0 }
 0x70e   :  { %1396 = vmatpush.msra.mxu1 %v1380_v3 }
 0x710   :  { %1397 = vmatpush.msra.mxu1 %v1379_v47 }
 0x712   :  { %1398 = vmatpush.msra.mxu1 %v1378_v40 }
 0x714   :  { %1399 = vmatpush.msra.mxu1 %v1377_v10 }
 0x715   :  { %1471 = vmatmul.msk.f32.vlgmr.msra.gmra.mxu1 %vm695_vm0, %v1470_v41 }
 0x792   :  { %v1401_v62 = vpop.f32.mrf.mxu1 }
 0x793   :  { %v1404_v60 = vadd.f32 %v1401_v62, %v1325_v26 }
 0x795   :  { %v1406_v32 = vadd.f32 %v1405_v33, %v1404_v60 }
 0x797   :  { %v1472_v49 = vmul.f32 -1.442695, %v1406_v32 }
 0x799   :  { %1608 = vpow2.f32 %v1472_v49 }
 0x79f   :  { %v1609_v50 = vpop.eup %1608 }
 0x7a0   :  { %v1410_v51 = vadd.f32 1.0, %v1609_v50 }
 0x7a2   :  { %1610 = vrcp.f32 %v1410_v51  ;;  %v1422_v55 = vand.u32 2147483648, %v1410_v51  ;;  %v1420_v57 = vand.u32 2147483647, %v1410_v51  ;;  %vm1416_vm0 = vweird.f32 %v1410_v51 }
 0x7a4   :  { %v1423_v58 = vor.u32 1.1754944e-38, %v1422_v55  ;;  %vm1421_vm7 = vcmp.eq.f32.partialorder %v1420_v57, 8.507059e+37 }
 0x7a8   :  { %v1611_v53 = vpop.eup %1610 }
 0x7a9   :  { %v1412_v46 = vmul.f32 %v1611_v53, %v1410_v51  ;;  %vm1417_vm5 = vweird.f32 %v1611_v53 }
 0x7aa   :  { %vm1418_vm6 = vmor %vm1416_vm0, %vm1417_vm5 }
 0x7ab   :  { %v1413_v2 = vsub.f32 1.0, %v1412_v46 }
 0x7ad   :  { %v1414_v15 = vmul.f32 %v1611_v53, %v1413_v2 }
 0x7af   :  { %v1415_v59 = vadd.f32 %v1611_v53, %v1414_v15 }
 0x7b1   :  { %v1419_v61 = vsel %vm1418_vm6, %v1611_v53, %v1415_v59 }
 0x7b2   :  { %v1424_v1 = vsel %vm1421_vm7, %v1423_v58, %v1419_v61 }
 0x7b3   :  { %1426 = vst [vmem:[#allocation6] sm:$0x1] %v1424_v1 }
 0x7b4   :  { %1437 = dma.vmem_to_hbm [thread:$0]  %s1433_s27, 16, %s1435_s29, [#allocation4]  }
 0x7b5   :  { %1651 = dma.done.wait [#allocation4], 16  }
 0x7b6   :  { %1652 = vsyncadd [#allocation4], 4294967280 }
 0x7b7   :  { %1442 = vsyncpa [#allocation4], 1 }
 0x7b8   :  { %1443 = vsyncpa [#allocation5], 1 }

</bundles_post_ra>
